<compile_context>
chip_gen: v6e
topology: v6e:2x2x1
jax: 0.10.0
libtpu: 0.0.40
codegen_flags: <defaults>
</compile_context>

<pallas_src>
import functools

import jax
import jax.numpy as jnp
from jax.experimental import pallas as pl
from jax.experimental.pallas import tpu as pltpu

NEG_INF = -1e30
LN_EPS = 1e-5


# ----------------------------- shared in-kernel helpers -----------------------------
def _layer_norm_f32(x, g, b):
    mu = jnp.mean(x, axis=-1, keepdims=True)
    var = jnp.mean((x - mu) ** 2, axis=-1, keepdims=True)
    return (x - mu) * jax.lax.rsqrt(var + LN_EPS) * g + b


def _mha_from_qkv(q, k, v, bias, n_heads, scale):
    """q: (Tq, E), k/v: (Tk, E), bias broadcastable to (Tq, Tk). f32 in/out."""
    Tq, E = q.shape
    D = E // n_heads
    outs = []
    for h in range(n_heads):
        sl = slice(h * D, (h + 1) * D)
        qh = (q[:, sl] * scale).astype(jnp.bfloat16)
        kh = k[:, sl].astype(jnp.bfloat16)
        vh = v[:, sl].astype(jnp.bfloat16)
        # contract q's last dim with k's last dim (no materialized k.T)
        s = jax.lax.dot_general(qh, kh, (((1,), (1,)), ((), ())),
                                preferred_element_type=jnp.float32)
        s = s + bias
        m = jnp.max(s, axis=-1, keepdims=True)
        p = jnp.exp(s - m)
        p = p * pl.reciprocal(jnp.sum(p, axis=-1, keepdims=True), approx=True)
        outs.append(jnp.dot(p.astype(jnp.bfloat16), vh,
                            preferred_element_type=jnp.float32))
    return jnp.concatenate(outs, axis=-1)  # (Tq, E)


# --------------------------- fully fused decoder block kernel -----------------------
def _decoder_block_kernel(x_ref, enc_ref, sa_kp_ref, ca_kp_ref,
                          ln1_g_ref, ln1_b_ref, ln2_g_ref, ln2_b_ref,
                          ln3_g_ref, ln3_b_ref,
                          w_qkv_ref, b_qkv_ref, w_so_ref, b_so_ref,
                          w_q_ref, b_q_ref, w_kv_ref, b_kv_ref,
                          w_co_ref, b_co_ref,
                          w_ff1_ref, b_ff1_ref, w_ff2_ref, b_ff2_ref,
                          o_ref, *, n_heads, ca_causal):
    x = x_ref[0].astype(jnp.float32)                       # (T, E)
    enc = enc_ref[0].astype(jnp.float32)                   # (Tk, E)
    T, E = x.shape
    Tk = enc.shape[0]
    D = E // n_heads
    scale = 1.0 / (D ** 0.5)

    # ---- stage 1: LN1 + causal/padded self-attention + out-proj + residual
    xn = _layer_norm_f32(x, ln1_g_ref[...], ln1_b_ref[...])
    qkv = (jnp.dot(xn.astype(jnp.bfloat16), w_qkv_ref[...],
                   preferred_element_type=jnp.float32) + b_qkv_ref[...])
    q, k, v = qkv[:, :E], qkv[:, E:2 * E], qkv[:, 2 * E:]

    kp = jnp.where(sa_kp_ref[0] != 0, 0.0, NEG_INF)        # (1, T)
    row = jax.lax.broadcasted_iota(jnp.int32, (T, T), 0)
    col = jax.lax.broadcasted_iota(jnp.int32, (T, T), 1)
    bias = jnp.where(col <= row, 0.0, NEG_INF) + kp        # (T, T)

    attn = _mha_from_qkv(q, k, v, bias, n_heads, scale)    # (T, E)
    x = x + (jnp.dot(attn.astype(jnp.bfloat16), w_so_ref[...],
                     preferred_element_type=jnp.float32) + b_so_ref[...])

    # ---- stage 2: LN2 + cross-attention (optional causal/padding) + residual
    xn = _layer_norm_f32(x, ln2_g_ref[...], ln2_b_ref[...])
    q = (jnp.dot(xn.astype(jnp.bfloat16), w_q_ref[...],
                 preferred_element_type=jnp.float32) + b_q_ref[...])      # (T, E)
    kv = (jnp.dot(enc.astype(jnp.bfloat16), w_kv_ref[...],
                  preferred_element_type=jnp.float32) + b_kv_ref[...])    # (Tk, 2E)
    k, v = kv[:, :E], kv[:, E:]

    kp = jnp.where(ca_kp_ref[0] != 0, 0.0, NEG_INF)        # (1, Tk)
    if ca_causal:
        row = jax.lax.broadcasted_iota(jnp.int32, (T, Tk), 0)
        col = jax.lax.broadcasted_iota(jnp.int32, (T, Tk), 1)
        bias = kp + jnp.where(col <= row, 0.0, NEG_INF)    # (T, Tk)
    else:
        bias = kp                                          # broadcasts over rows

    attn = _mha_from_qkv(q, k, v, bias, n_heads, scale)    # (T, E)
    x = x + (jnp.dot(attn.astype(jnp.bfloat16), w_co_ref[...],
                     preferred_element_type=jnp.float32) + b_co_ref[...])

    # ---- stage 3: LN3 + FFN (Linear/ReLU/Linear) + residual
    xn = _layer_norm_f32(x, ln3_g_ref[...], ln3_b_ref[...])
    h = (jnp.dot(xn.astype(jnp.bfloat16), w_ff1_ref[...],
                 preferred_element_type=jnp.float32) + b_ff1_ref[...])
    h = jnp.maximum(h, 0.0)
    y = (jnp.dot(h.astype(jnp.bfloat16), w_ff2_ref[...],
                 preferred_element_type=jnp.float32) + b_ff2_ref[...])
    o_ref[0] = (x + y).astype(o_ref.dtype)


# ---------------------------------- DecoderBlock ------------------------------------
def decoder_block_forward(params, x, encoder_output, attention_mask,
                          n_heads, block_size):
    B, T, E = x.shape
    Tk = encoder_output.shape[1]
    Hd = params["ff_w1"].shape[1]

    # cross-attention masking matches the reference PyTorch branching
    ca_causal = (Tk == block_size)
    sa_mask = attention_mask.reshape(B, 1, T).astype(jnp.int32)
    if ca_causal:
        ca_mask = attention_mask.reshape(B, 1, Tk).astype(jnp.int32)
    else:
        ca_mask = jnp.ones((B, 1, Tk), jnp.int32)          # no masking

    bf16 = jnp.bfloat16
    kernel = functools.partial(_decoder_block_kernel,
                               n_heads=n_heads, ca_causal=ca_causal)

    def const2d(r, c):
        return pl.BlockSpec((r, c), lambda b: (0, 0))

    out = pl.pallas_call(
        kernel,
        out_shape=jax.ShapeDtypeStruct((B, T, E), x.dtype),
        grid=(B,),
        in_specs=[
            pl.BlockSpec((1, T, E), lambda b: (b, 0, 0)),      # x
            pl.BlockSpec((1, Tk, E), lambda b: (b, 0, 0)),     # encoder output
            pl.BlockSpec((1, 1, T), lambda b: (b, 0, 0)),      # self key-padding mask
            pl.BlockSpec((1, 1, Tk), lambda b: (b, 0, 0)),     # cross key-padding mask
            const2d(1, E), const2d(1, E),                      # ln1 g/b
            const2d(1, E), const2d(1, E),                      # ln2 g/b
            const2d(1, E), const2d(1, E),                      # ln3 g/b
            const2d(E, 3 * E), const2d(1, 3 * E),              # sa qkv
            const2d(E, E), const2d(1, E),                      # sa out-proj
            const2d(E, E), const2d(1, E),                      # ca q
            const2d(E, 2 * E), const2d(1, 2 * E),              # ca kv
            const2d(E, E), const2d(1, E),                      # ca out-proj
            const2d(E, Hd), const2d(1, Hd),                    # ffn w1/b1
            const2d(Hd, E), const2d(1, E),                     # ffn w2/b2
        ],
        out_specs=pl.BlockSpec((1, T, E), lambda b: (b, 0, 0)),
        compiler_params=pltpu.CompilerParams(dimension_semantics=("parallel",)),
    )(x, encoder_output, sa_mask, ca_mask,
      params["ln1_g"].reshape(1, E), params["ln1_b"].reshape(1, E),
      params["ln2_g"].reshape(1, E), params["ln2_b"].reshape(1, E),
      params["ln3_g"].reshape(1, E), params["ln3_b"].reshape(1, E),
      params["sa"]["w_qkv"].astype(bf16), params["sa"]["b_qkv"].reshape(1, 3 * E),
      params["sa"]["w_out"].astype(bf16), params["sa"]["b_out"].reshape(1, E),
      params["ca"]["w_q"].astype(bf16), params["ca"]["b_q"].reshape(1, E),
      params["ca"]["w_kv"].astype(bf16), params["ca"]["b_kv"].reshape(1, 2 * E),
      params["ca"]["w_out"].astype(bf16), params["ca"]["b_out"].reshape(1, E),
      params["ff_w1"].astype(bf16), params["ff_b1"].reshape(1, Hd),
      params["ff_w2"].astype(bf16), params["ff_b2"].reshape(1, E))
    return out, encoder_output, attention_mask


# ---------------------------------- Param init --------------------------------------
def init_params(key, n_embeddings):
    E = n_embeddings
    keys = jax.random.split(key, 14)

    def norm(k, shape):
        return 0.02 * jax.random.normal(k, shape, jnp.float32)

    # weights are stored pre-transposed (input-dim first) -> no wrapper .T needed
    return {
        "sa": {
            "w_qkv": norm(keys[0], (E, 3 * E)),
            "b_qkv": norm(keys[1], (3 * E,)),
            "w_out": norm(keys[2], (E, E)),
            "b_out": norm(keys[3], (E,)),
        },
        "ca": {
            "w_q": norm(keys[4], (E, E)),
            "b_q": norm(keys[5], (E,)),
            "w_kv": norm(keys[6], (E, 2 * E)),
            "b_kv": norm(keys[7], (2 * E,)),
            "w_out": norm(keys[8], (E, E)),
            "b_out": norm(keys[9], (E,)),
        },
        "ff_w1": norm(keys[10], (E, 4 * E)),
        "ff_b1": norm(keys[11], (4 * E,)),
        "ff_w2": norm(keys[12], (4 * E, E)),
        "ff_b2": norm(keys[13], (E,)),
        "ln1_g": jnp.ones((E,), jnp.float32), "ln1_b": jnp.zeros((E,), jnp.float32),
        "ln2_g": jnp.ones((E,), jnp.float32), "ln2_b": jnp.zeros((E,), jnp.float32),
        "ln3_g": jnp.ones((E,), jnp.float32), "ln3_b": jnp.zeros((E,), jnp.float32),
    }


def prepare_params(params):
    """One-time cast of matmul weights to bf16 (halves weight HBM traffic).
    Biases / LN params stay f32; matmuls accumulate in f32."""
    bf16 = jnp.bfloat16
    p = dict(params)
    p["sa"] = {k: (v.astype(bf16) if k.startswith("w_") else v)
               for k, v in params["sa"].items()}
    p["ca"] = {k: (v.astype(bf16) if k.startswith("w_") else v)
               for k, v in params["ca"].items()}
    p["ff_w1"] = params["ff_w1"].astype(bf16)
    p["ff_w2"] = params["ff_w2"].astype(bf16)
    return p


if __name__ == "__main__":
    n_heads = 4
    n_embeddings = 32
    block_size = 8                    # decoder sequence length T
    B, T = 2, block_size

    root = jax.random.PRNGKey(0)
    k_p, k_x, k_enc1, k_enc2 = jax.random.split(root, 4)

    params = prepare_params(init_params(k_p, n_embeddings))
    x = jax.random.normal(k_x, (B, T, n_embeddings), jnp.float32)
    # attention_mask: 1 = valid token, 0 = padding (batch 1 has 6 valid tokens)
    attention_mask = jnp.array([[1] * T, [1] * 6 + [0] * (T - 6)], dtype=jnp.int32)

    # Branch A: encoder length != block_size -> unmasked cross-attention
    enc_a = jax.random.normal(k_enc1, (B, 16, n_embeddings), jnp.float32)
    out_a, enc_out_a, mask_out_a = decoder_block_forward(
        params, x, enc_a, attention_mask, n_heads, block_size)

    # Branch B: encoder length == block_size -> causal + key-padding cross-attention
    enc_b = jax.random.normal(k_enc2, (B, block_size, n_embeddings), jnp.float32)
    out_b, _, _ = decoder_block_forward(
        params, x, enc_b, attention_mask, n_heads, block_size)

    jax.block_until_ready(out_a)
    jax.block_until_ready(out_b)
    jax.block_until_ready(enc_out_a)
    jax.block_until_ready(mask_out_a)

    assert out_a.shape == (B, T, n_embeddings)
    assert out_b.shape == (B, T, n_embeddings)
    assert not bool(jnp.any(jnp.isnan(out_a)))
    assert not bool(jnp.any(jnp.isnan(out_b)))
    print("KERNEL_OK")
</pallas_src>

<mosaic_0001>
module attributes {stable_mosaic.version = 11 : i64} {
  func.func @_decoder_block_kernel(%arg0: i32, %arg1: memref<1x8x32xf32, #tpu.memory_space<vmem>>, %arg2: memref<1x16x32xf32, #tpu.memory_space<vmem>>, %arg3: memref<1x1x8xi32, #tpu.memory_space<vmem>>, %arg4: memref<1x1x16xi32, #tpu.memory_space<vmem>>, %arg5: memref<1x32xf32, #tpu.memory_space<vmem>>, %arg6: memref<1x32xf32, #tpu.memory_space<vmem>>, %arg7: memref<1x32xf32, #tpu.memory_space<vmem>>, %arg8: memref<1x32xf32, #tpu.memory_space<vmem>>, %arg9: memref<1x32xf32, #tpu.memory_space<vmem>>, %arg10: memref<1x32xf32, #tpu.memory_space<vmem>>, %arg11: memref<32x96xbf16, #tpu.memory_space<vmem>>, %arg12: memref<1x96xf32, #tpu.memory_space<vmem>>, %arg13: memref<32x32xbf16, #tpu.memory_space<vmem>>, %arg14: memref<1x32xf32, #tpu.memory_space<vmem>>, %arg15: memref<32x32xbf16, #tpu.memory_space<vmem>>, %arg16: memref<1x32xf32, #tpu.memory_space<vmem>>, %arg17: memref<32x64xbf16, #tpu.memory_space<vmem>>, %arg18: memref<1x64xf32, #tpu.memory_space<vmem>>, %arg19: memref<32x32xbf16, #tpu.memory_space<vmem>>, %arg20: memref<1x32xf32, #tpu.memory_space<vmem>>, %arg21: memref<32x128xbf16, #tpu.memory_space<vmem>>, %arg22: memref<1x128xf32, #tpu.memory_space<vmem>>, %arg23: memref<128x32xbf16, #tpu.memory_space<vmem>>, %arg24: memref<1x32xf32, #tpu.memory_space<vmem>>, %arg25: memref<1x8x32xf32, #tpu.memory_space<vmem>>) attributes {dimension_semantics = [#tpu.dimension_semantics<parallel>], iteration_bounds = array<i64: 2>, scalar_prefetch = 0 : i64, scratch_operands = 0 : i64, tpu.core_type = #tpu.core_type<tc>, window_params = [{transform_indices = @transform_0, window_bounds = array<i64: 1, 8, 32>}, {transform_indices = @transform_1, window_bounds = array<i64: 1, 16, 32>}, {transform_indices = @transform_2, window_bounds = array<i64: 1, 1, 8>}, {transform_indices = @transform_3, window_bounds = array<i64: 1, 1, 16>}, {pipeline_mode = #tpu.pipeline_mode<synchronous>, transform_indices = @transform_4, window_bounds = array<i64: 1, 32>}, {pipeline_mode = #tpu.pipeline_mode<synchronous>, transform_indices = @transform_5, window_bounds = array<i64: 1, 32>}, {pipeline_mode = #tpu.pipeline_mode<synchronous>, transform_indices = @transform_6, window_bounds = array<i64: 1, 32>}, {pipeline_mode = #tpu.pipeline_mode<synchronous>, transform_indices = @transform_7, window_bounds = array<i64: 1, 32>}, {pipeline_mode = #tpu.pipeline_mode<synchronous>, transform_indices = @transform_8, window_bounds = array<i64: 1, 32>}, {pipeline_mode = #tpu.pipeline_mode<synchronous>, transform_indices = @transform_9, window_bounds = array<i64: 1, 32>}, {pipeline_mode = #tpu.pipeline_mode<synchronous>, transform_indices = @transform_10, window_bounds = array<i64: 32, 96>}, {pipeline_mode = #tpu.pipeline_mode<synchronous>, transform_indices = @transform_11, window_bounds = array<i64: 1, 96>}, {pipeline_mode = #tpu.pipeline_mode<synchronous>, transform_indices = @transform_12, window_bounds = array<i64: 32, 32>}, {pipeline_mode = #tpu.pipeline_mode<synchronous>, transform_indices = @transform_13, window_bounds = array<i64: 1, 32>}, {pipeline_mode = #tpu.pipeline_mode<synchronous>, transform_indices = @transform_14, window_bounds = array<i64: 32, 32>}, {pipeline_mode = #tpu.pipeline_mode<synchronous>, transform_indices = @transform_15, window_bounds = array<i64: 1, 32>}, {pipeline_mode = #tpu.pipeline_mode<synchronous>, transform_indices = @transform_16, window_bounds = array<i64: 32, 64>}, {pipeline_mode = #tpu.pipeline_mode<synchronous>, transform_indices = @transform_17, window_bounds = array<i64: 1, 64>}, {pipeline_mode = #tpu.pipeline_mode<synchronous>, transform_indices = @transform_18, window_bounds = array<i64: 32, 32>}, {pipeline_mode = #tpu.pipeline_mode<synchronous>, transform_indices = @transform_19, window_bounds = array<i64: 1, 32>}, {pipeline_mode = #tpu.pipeline_mode<synchronous>, transform_indices = @transform_20, window_bounds = array<i64: 32, 128>}, {pipeline_mode = #tpu.pipeline_mode<synchronous>, transform_indices = @transform_21, window_bounds = array<i64: 1, 128>}, {pipeline_mode = #tpu.pipeline_mode<synchronous>, transform_indices = @transform_22, window_bounds = array<i64: 128, 32>}, {pipeline_mode = #tpu.pipeline_mode<synchronous>, transform_indices = @transform_23, window_bounds = array<i64: 1, 32>}, {transform_indices = @transform_24, window_bounds = array<i64: 1, 8, 32>}]} {
    %c0 = arith.constant 0 : index
    %c0_0 = arith.constant 0 : index
    %c0_1 = arith.constant 0 : index
    %0 = vector.load %arg1[%c0, %c0_0, %c0_1] : memref<1x8x32xf32, #tpu.memory_space<vmem>>, vector<1x8x32xf32>
    %1 = vector.shape_cast %0 : vector<1x8x32xf32> to vector<8x32xf32>
    %c0_2 = arith.constant 0 : index
    %c0_3 = arith.constant 0 : index
    %c0_4 = arith.constant 0 : index
    %2 = vector.load %arg2[%c0_2, %c0_3, %c0_4] : memref<1x16x32xf32, #tpu.memory_space<vmem>>, vector<1x16x32xf32>
    %3 = vector.shape_cast %2 : vector<1x16x32xf32> to vector<16x32xf32>
    %c0_5 = arith.constant 0 : index
    %c0_6 = arith.constant 0 : index
    %4 = vector.load %arg5[%c0_5, %c0_6] : memref<1x32xf32, #tpu.memory_space<vmem>>, vector<1x32xf32>
    %c0_7 = arith.constant 0 : index
    %c0_8 = arith.constant 0 : index
    %5 = vector.load %arg6[%c0_7, %c0_8] : memref<1x32xf32, #tpu.memory_space<vmem>>, vector<1x32xf32>
    %cst = arith.constant dense<0.000000e+00> : vector<8xf32>
    %6 = vector.multi_reduction <add>, %1, %cst [1] : vector<8x32xf32> to vector<8xf32>
    %7 = vector.shape_cast %6 : vector<8xf32> to vector<8x1xf32>
    %cst_9 = arith.constant 3.200000e+01 : f32
    %8 = vector.broadcast %cst_9 : f32 to vector<8x1xf32>
    %9 = arith.divf %7, %8 : vector<8x1xf32>
    %10 = vector.broadcast %9 : vector<8x1xf32> to vector<8x32xf32>
    %11 = arith.subf %1, %10 : vector<8x32xf32>
    %12 = arith.mulf %11, %11 : vector<8x32xf32>
    %cst_10 = arith.constant dense<0.000000e+00> : vector<8xf32>
    %13 = vector.multi_reduction <add>, %12, %cst_10 [1] : vector<8x32xf32> to vector<8xf32>
    %14 = vector.shape_cast %13 : vector<8xf32> to vector<8x1xf32>
    %cst_11 = arith.constant 3.200000e+01 : f32
    %15 = vector.broadcast %cst_11 : f32 to vector<8x1xf32>
    %16 = arith.divf %14, %15 : vector<8x1xf32>
    %17 = vector.broadcast %9 : vector<8x1xf32> to vector<8x32xf32>
    %18 = arith.subf %1, %17 : vector<8x32xf32>
    %cst_12 = arith.constant 9.99999974E-6 : f32
    %19 = vector.broadcast %cst_12 : f32 to vector<8x1xf32>
    %20 = arith.addf %16, %19 : vector<8x1xf32>
    %21 = math.rsqrt %20 : vector<8x1xf32>
    %22 = vector.broadcast %21 : vector<8x1xf32> to vector<8x32xf32>
    %23 = arith.mulf %18, %22 : vector<8x32xf32>
    %24 = vector.broadcast %4 : vector<1x32xf32> to vector<8x32xf32>
    %25 = arith.mulf %23, %24 : vector<8x32xf32>
    %26 = vector.broadcast %5 : vector<1x32xf32> to vector<8x32xf32>
    %27 = arith.addf %25, %26 : vector<8x32xf32>
    %28 = arith.truncf %27 : vector<8x32xf32> to vector<8x32xbf16>
    %c0_13 = arith.constant 0 : index
    %c0_14 = arith.constant 0 : index
    %29 = vector.load %arg11[%c0_13, %c0_14] : memref<32x96xbf16, #tpu.memory_space<vmem>>, vector<32x96xbf16>
    %cst_15 = arith.constant dense<0.000000e+00> : vector<8x96xf32>
    %30 = tpu.matmul %28, %29, %cst_15 {dimension_numbers = #tpu.dot_dimension_numbers<[1], [0], [0], [1], [0, 0, 1, 1], [], []>} : vector<8x32xbf16>, vector<32x96xbf16>, vector<8x96xf32> -> vector<8x96xf32>
    %c0_16 = arith.constant 0 : index
    %c0_17 = arith.constant 0 : index
    %31 = vector.load %arg12[%c0_16, %c0_17] : memref<1x96xf32, #tpu.memory_space<vmem>>, vector<1x96xf32>
    %32 = vector.broadcast %31 : vector<1x96xf32> to vector<8x96xf32>
    %33 = arith.addf %30, %32 : vector<8x96xf32>
    %34 = vector.extract_strided_slice %33 {offsets = [0, 0], sizes = [8, 32], strides = [1, 1]} : vector<8x96xf32> to vector<8x32xf32>
    %35 = vector.extract_strided_slice %33 {offsets = [0, 32], sizes = [8, 32], strides = [1, 1]} : vector<8x96xf32> to vector<8x32xf32>
    %36 = vector.extract_strided_slice %33 {offsets = [0, 64], sizes = [8, 32], strides = [1, 1]} : vector<8x96xf32> to vector<8x32xf32>
    %c0_18 = arith.constant 0 : index
    %c0_19 = arith.constant 0 : index
    %c0_20 = arith.constant 0 : index
    %37 = vector.load %arg3[%c0_18, %c0_19, %c0_20] : memref<1x1x8xi32, #tpu.memory_space<vmem>>, vector<1x1x8xi32>
    %38 = vector.shape_cast %37 : vector<1x1x8xi32> to vector<1x8xi32>
    %c0_i32 = arith.constant 0 : i32
    %39 = vector.broadcast %c0_i32 : i32 to vector<1x8xi32>
    %40 = arith.cmpi ne, %38, %39 : vector<1x8xi32>
    %cst_21 = arith.constant 0.000000e+00 : f32
    %cst_22 = arith.constant -1.000000e+30 : f32
    %41 = vector.broadcast %cst_21 : f32 to vector<1x8xf32>
    %42 = vector.broadcast %cst_22 : f32 to vector<1x8xf32>
    %43 = arith.select %40, %41, %42 : vector<1x8xi1>, vector<1x8xf32>
    %44 = tpu.iota {dimensions = array<i32: 0>} : vector<8x8xi32>
    %45 = tpu.iota {dimensions = array<i32: 1>} : vector<8x8xi32>
    %46 = arith.cmpi sle, %45, %44 : vector<8x8xi32>
    %cst_23 = arith.constant 0.000000e+00 : f32
    %cst_24 = arith.constant -1.000000e+30 : f32
    %47 = vector.broadcast %cst_23 : f32 to vector<8x8xf32>
    %48 = vector.broadcast %cst_24 : f32 to vector<8x8xf32>
    %49 = arith.select %46, %47, %48 : vector<8x8xi1>, vector<8x8xf32>
    %50 = vector.broadcast %43 : vector<1x8xf32> to vector<8x8xf32>
    %51 = arith.addf %49, %50 : vector<8x8xf32>
    %52 = vector.extract_strided_slice %34 {offsets = [0, 0], sizes = [8, 8], strides = [1, 1]} : vector<8x32xf32> to vector<8x8xf32>
    %cst_25 = arith.constant 0.353553385 : f32
    %53 = vector.broadcast %cst_25 : f32 to vector<8x8xf32>
    %54 = arith.mulf %52, %53 : vector<8x8xf32>
    %55 = arith.truncf %54 : vector<8x8xf32> to vector<8x8xbf16>
    %56 = vector.extract_strided_slice %35 {offsets = [0, 0], sizes = [8, 8], strides = [1, 1]} : vector<8x32xf32> to vector<8x8xf32>
    %57 = arith.truncf %56 : vector<8x8xf32> to vector<8x8xbf16>
    %58 = vector.extract_strided_slice %36 {offsets = [0, 0], sizes = [8, 8], strides = [1, 1]} : vector<8x32xf32> to vector<8x8xf32>
    %59 = arith.truncf %58 : vector<8x8xf32> to vector<8x8xbf16>
    %cst_26 = arith.constant dense<0.000000e+00> : vector<8x8xf32>
    %60 = tpu.matmul %55, %57, %cst_26 {dimension_numbers = #tpu.dot_dimension_numbers<[1], [1], [0], [0], [0, 0, 1, 0], [], []>} : vector<8x8xbf16>, vector<8x8xbf16>, vector<8x8xf32> -> vector<8x8xf32>
    %61 = arith.addf %60, %51 : vector<8x8xf32>
    %cst_27 = arith.constant dense<0xFF800000> : vector<8xf32>
    %62 = vector.multi_reduction <maximumf>, %61, %cst_27 [1] : vector<8x8xf32> to vector<8xf32>
    %63 = vector.shape_cast %62 : vector<8xf32> to vector<8x1xf32>
    %64 = vector.broadcast %63 : vector<8x1xf32> to vector<8x8xf32>
    %65 = arith.subf %61, %64 : vector<8x8xf32>
    %66 = math.exp %65 : vector<8x8xf32>
    %cst_28 = arith.constant dense<0.000000e+00> : vector<8xf32>
    %67 = vector.multi_reduction <add>, %66, %cst_28 [1] : vector<8x8xf32> to vector<8xf32>
    %68 = vector.shape_cast %67 : vector<8xf32> to vector<8x1xf32>
    %69 = tpu.reciprocal %68 {approx = true} : vector<8x1xf32> -> vector<8x1xf32>
    %70 = vector.broadcast %69 : vector<8x1xf32> to vector<8x8xf32>
    %71 = arith.mulf %66, %70 : vector<8x8xf32>
    %72 = arith.truncf %71 : vector<8x8xf32> to vector<8x8xbf16>
    %cst_29 = arith.constant dense<0.000000e+00> : vector<8x8xf32>
    %73 = tpu.matmul %72, %59, %cst_29 {dimension_numbers = #tpu.dot_dimension_numbers<[1], [0], [0], [1], [0, 0, 1, 1], [], []>} : vector<8x8xbf16>, vector<8x8xbf16>, vector<8x8xf32> -> vector<8x8xf32>
    %74 = vector.extract_strided_slice %34 {offsets = [0, 8], sizes = [8, 8], strides = [1, 1]} : vector<8x32xf32> to vector<8x8xf32>
    %cst_30 = arith.constant 0.353553385 : f32
    %75 = vector.broadcast %cst_30 : f32 to vector<8x8xf32>
    %76 = arith.mulf %74, %75 : vector<8x8xf32>
    %77 = arith.truncf %76 : vector<8x8xf32> to vector<8x8xbf16>
    %78 = vector.extract_strided_slice %35 {offsets = [0, 8], sizes = [8, 8], strides = [1, 1]} : vector<8x32xf32> to vector<8x8xf32>
    %79 = arith.truncf %78 : vector<8x8xf32> to vector<8x8xbf16>
    %80 = vector.extract_strided_slice %36 {offsets = [0, 8], sizes = [8, 8], strides = [1, 1]} : vector<8x32xf32> to vector<8x8xf32>
    %81 = arith.truncf %80 : vector<8x8xf32> to vector<8x8xbf16>
    %cst_31 = arith.constant dense<0.000000e+00> : vector<8x8xf32>
    %82 = tpu.matmul %77, %79, %cst_31 {dimension_numbers = #tpu.dot_dimension_numbers<[1], [1], [0], [0], [0, 0, 1, 0], [], []>} : vector<8x8xbf16>, vector<8x8xbf16>, vector<8x8xf32> -> vector<8x8xf32>
    %83 = arith.addf %82, %51 : vector<8x8xf32>
    %cst_32 = arith.constant dense<0xFF800000> : vector<8xf32>
    %84 = vector.multi_reduction <maximumf>, %83, %cst_32 [1] : vector<8x8xf32> to vector<8xf32>
    %85 = vector.shape_cast %84 : vector<8xf32> to vector<8x1xf32>
    %86 = vector.broadcast %85 : vector<8x1xf32> to vector<8x8xf32>
    %87 = arith.subf %83, %86 : vector<8x8xf32>
    %88 = math.exp %87 : vector<8x8xf32>
    %cst_33 = arith.constant dense<0.000000e+00> : vector<8xf32>
    %89 = vector.multi_reduction <add>, %88, %cst_33 [1] : vector<8x8xf32> to vector<8xf32>
    %90 = vector.shape_cast %89 : vector<8xf32> to vector<8x1xf32>
    %91 = tpu.reciprocal %90 {approx = true} : vector<8x1xf32> -> vector<8x1xf32>
    %92 = vector.broadcast %91 : vector<8x1xf32> to vector<8x8xf32>
    %93 = arith.mulf %88, %92 : vector<8x8xf32>
    %94 = arith.truncf %93 : vector<8x8xf32> to vector<8x8xbf16>
    %cst_34 = arith.constant dense<0.000000e+00> : vector<8x8xf32>
    %95 = tpu.matmul %94, %81, %cst_34 {dimension_numbers = #tpu.dot_dimension_numbers<[1], [0], [0], [1], [0, 0, 1, 1], [], []>} : vector<8x8xbf16>, vector<8x8xbf16>, vector<8x8xf32> -> vector<8x8xf32>
    %96 = vector.extract_strided_slice %34 {offsets = [0, 16], sizes = [8, 8], strides = [1, 1]} : vector<8x32xf32> to vector<8x8xf32>
    %cst_35 = arith.constant 0.353553385 : f32
    %97 = vector.broadcast %cst_35 : f32 to vector<8x8xf32>
    %98 = arith.mulf %96, %97 : vector<8x8xf32>
    %99 = arith.truncf %98 : vector<8x8xf32> to vector<8x8xbf16>
    %100 = vector.extract_strided_slice %35 {offsets = [0, 16], sizes = [8, 8], strides = [1, 1]} : vector<8x32xf32> to vector<8x8xf32>
    %101 = arith.truncf %100 : vector<8x8xf32> to vector<8x8xbf16>
    %102 = vector.extract_strided_slice %36 {offsets = [0, 16], sizes = [8, 8], strides = [1, 1]} : vector<8x32xf32> to vector<8x8xf32>
    %103 = arith.truncf %102 : vector<8x8xf32> to vector<8x8xbf16>
    %cst_36 = arith.constant dense<0.000000e+00> : vector<8x8xf32>
    %104 = tpu.matmul %99, %101, %cst_36 {dimension_numbers = #tpu.dot_dimension_numbers<[1], [1], [0], [0], [0, 0, 1, 0], [], []>} : vector<8x8xbf16>, vector<8x8xbf16>, vector<8x8xf32> -> vector<8x8xf32>
    %105 = arith.addf %104, %51 : vector<8x8xf32>
    %cst_37 = arith.constant dense<0xFF800000> : vector<8xf32>
    %106 = vector.multi_reduction <maximumf>, %105, %cst_37 [1] : vector<8x8xf32> to vector<8xf32>
    %107 = vector.shape_cast %106 : vector<8xf32> to vector<8x1xf32>
    %108 = vector.broadcast %107 : vector<8x1xf32> to vector<8x8xf32>
    %109 = arith.subf %105, %108 : vector<8x8xf32>
    %110 = math.exp %109 : vector<8x8xf32>
    %cst_38 = arith.constant dense<0.000000e+00> : vector<8xf32>
    %111 = vector.multi_reduction <add>, %110, %cst_38 [1] : vector<8x8xf32> to vector<8xf32>
    %112 = vector.shape_cast %111 : vector<8xf32> to vector<8x1xf32>
    %113 = tpu.reciprocal %112 {approx = true} : vector<8x1xf32> -> vector<8x1xf32>
    %114 = vector.broadcast %113 : vector<8x1xf32> to vector<8x8xf32>
    %115 = arith.mulf %110, %114 : vector<8x8xf32>
    %116 = arith.truncf %115 : vector<8x8xf32> to vector<8x8xbf16>
    %cst_39 = arith.constant dense<0.000000e+00> : vector<8x8xf32>
    %117 = tpu.matmul %116, %103, %cst_39 {dimension_numbers = #tpu.dot_dimension_numbers<[1], [0], [0], [1], [0, 0, 1, 1], [], []>} : vector<8x8xbf16>, vector<8x8xbf16>, vector<8x8xf32> -> vector<8x8xf32>
    %118 = vector.extract_strided_slice %34 {offsets = [0, 24], sizes = [8, 8], strides = [1, 1]} : vector<8x32xf32> to vector<8x8xf32>
    %cst_40 = arith.constant 0.353553385 : f32
    %119 = vector.broadcast %cst_40 : f32 to vector<8x8xf32>
    %120 = arith.mulf %118, %119 : vector<8x8xf32>
    %121 = arith.truncf %120 : vector<8x8xf32> to vector<8x8xbf16>
    %122 = vector.extract_strided_slice %35 {offsets = [0, 24], sizes = [8, 8], strides = [1, 1]} : vector<8x32xf32> to vector<8x8xf32>
    %123 = arith.truncf %122 : vector<8x8xf32> to vector<8x8xbf16>
    %124 = vector.extract_strided_slice %36 {offsets = [0, 24], sizes = [8, 8], strides = [1, 1]} : vector<8x32xf32> to vector<8x8xf32>
    %125 = arith.truncf %124 : vector<8x8xf32> to vector<8x8xbf16>
    %cst_41 = arith.constant dense<0.000000e+00> : vector<8x8xf32>
    %126 = tpu.matmul %121, %123, %cst_41 {dimension_numbers = #tpu.dot_dimension_numbers<[1], [1], [0], [0], [0, 0, 1, 0], [], []>} : vector<8x8xbf16>, vector<8x8xbf16>, vector<8x8xf32> -> vector<8x8xf32>
    %127 = arith.addf %126, %51 : vector<8x8xf32>
    %cst_42 = arith.constant dense<0xFF800000> : vector<8xf32>
    %128 = vector.multi_reduction <maximumf>, %127, %cst_42 [1] : vector<8x8xf32> to vector<8xf32>
    %129 = vector.shape_cast %128 : vector<8xf32> to vector<8x1xf32>
    %130 = vector.broadcast %129 : vector<8x1xf32> to vector<8x8xf32>
    %131 = arith.subf %127, %130 : vector<8x8xf32>
    %132 = math.exp %131 : vector<8x8xf32>
    %cst_43 = arith.constant dense<0.000000e+00> : vector<8xf32>
    %133 = vector.multi_reduction <add>, %132, %cst_43 [1] : vector<8x8xf32> to vector<8xf32>
    %134 = vector.shape_cast %133 : vector<8xf32> to vector<8x1xf32>
    %135 = tpu.reciprocal %134 {approx = true} : vector<8x1xf32> -> vector<8x1xf32>
    %136 = vector.broadcast %135 : vector<8x1xf32> to vector<8x8xf32>
    %137 = arith.mulf %132, %136 : vector<8x8xf32>
    %138 = arith.truncf %137 : vector<8x8xf32> to vector<8x8xbf16>
    %cst_44 = arith.constant dense<0.000000e+00> : vector<8x8xf32>
    %139 = tpu.matmul %138, %125, %cst_44 {dimension_numbers = #tpu.dot_dimension_numbers<[1], [0], [0], [1], [0, 0, 1, 1], [], []>} : vector<8x8xbf16>, vector<8x8xbf16>, vector<8x8xf32> -> vector<8x8xf32>
    %140 = tpu.concatenate %73, %95, %117, %139 in 1 : vector<8x8xf32>, vector<8x8xf32>, vector<8x8xf32>, vector<8x8xf32> -> vector<8x32xf32>
    %141 = arith.truncf %140 : vector<8x32xf32> to vector<8x32xbf16>
    %c0_45 = arith.constant 0 : index
    %c0_46 = arith.constant 0 : index
    %142 = vector.load %arg13[%c0_45, %c0_46] : memref<32x32xbf16, #tpu.memory_space<vmem>>, vector<32x32xbf16>
    %cst_47 = arith.constant dense<0.000000e+00> : vector<8x32xf32>
    %143 = tpu.matmul %141, %142, %cst_47 {dimension_numbers = #tpu.dot_dimension_numbers<[1], [0], [0], [1], [0, 0, 1, 1], [], []>} : vector<8x32xbf16>, vector<32x32xbf16>, vector<8x32xf32> -> vector<8x32xf32>
    %c0_48 = arith.constant 0 : index
    %c0_49 = arith.constant 0 : index
    %144 = vector.load %arg14[%c0_48, %c0_49] : memref<1x32xf32, #tpu.memory_space<vmem>>, vector<1x32xf32>
    %145 = vector.broadcast %144 : vector<1x32xf32> to vector<8x32xf32>
    %146 = arith.addf %143, %145 : vector<8x32xf32>
    %147 = arith.addf %1, %146 : vector<8x32xf32>
    %c0_50 = arith.constant 0 : index
    %c0_51 = arith.constant 0 : index
    %148 = vector.load %arg7[%c0_50, %c0_51] : memref<1x32xf32, #tpu.memory_space<vmem>>, vector<1x32xf32>
    %c0_52 = arith.constant 0 : index
    %c0_53 = arith.constant 0 : index
    %149 = vector.load %arg8[%c0_52, %c0_53] : memref<1x32xf32, #tpu.memory_space<vmem>>, vector<1x32xf32>
    %cst_54 = arith.constant dense<0.000000e+00> : vector<8xf32>
    %150 = vector.multi_reduction <add>, %147, %cst_54 [1] : vector<8x32xf32> to vector<8xf32>
    %151 = vector.shape_cast %150 : vector<8xf32> to vector<8x1xf32>
    %cst_55 = arith.constant 3.200000e+01 : f32
    %152 = vector.broadcast %cst_55 : f32 to vector<8x1xf32>
    %153 = arith.divf %151, %152 : vector<8x1xf32>
    %154 = vector.broadcast %153 : vector<8x1xf32> to vector<8x32xf32>
    %155 = arith.subf %147, %154 : vector<8x32xf32>
    %156 = arith.mulf %155, %155 : vector<8x32xf32>
    %cst_56 = arith.constant dense<0.000000e+00> : vector<8xf32>
    %157 = vector.multi_reduction <add>, %156, %cst_56 [1] : vector<8x32xf32> to vector<8xf32>
    %158 = vector.shape_cast %157 : vector<8xf32> to vector<8x1xf32>
    %cst_57 = arith.constant 3.200000e+01 : f32
    %159 = vector.broadcast %cst_57 : f32 to vector<8x1xf32>
    %160 = arith.divf %158, %159 : vector<8x1xf32>
    %161 = vector.broadcast %153 : vector<8x1xf32> to vector<8x32xf32>
    %162 = arith.subf %147, %161 : vector<8x32xf32>
    %cst_58 = arith.constant 9.99999974E-6 : f32
    %163 = vector.broadcast %cst_58 : f32 to vector<8x1xf32>
    %164 = arith.addf %160, %163 : vector<8x1xf32>
    %165 = math.rsqrt %164 : vector<8x1xf32>
    %166 = vector.broadcast %165 : vector<8x1xf32> to vector<8x32xf32>
    %167 = arith.mulf %162, %166 : vector<8x32xf32>
    %168 = vector.broadcast %148 : vector<1x32xf32> to vector<8x32xf32>
    %169 = arith.mulf %167, %168 : vector<8x32xf32>
    %170 = vector.broadcast %149 : vector<1x32xf32> to vector<8x32xf32>
    %171 = arith.addf %169, %170 : vector<8x32xf32>
    %172 = arith.truncf %171 : vector<8x32xf32> to vector<8x32xbf16>
    %c0_59 = arith.constant 0 : index
    %c0_60 = arith.constant 0 : index
    %173 = vector.load %arg15[%c0_59, %c0_60] : memref<32x32xbf16, #tpu.memory_space<vmem>>, vector<32x32xbf16>
    %cst_61 = arith.constant dense<0.000000e+00> : vector<8x32xf32>
    %174 = tpu.matmul %172, %173, %cst_61 {dimension_numbers = #tpu.dot_dimension_numbers<[1], [0], [0], [1], [0, 0, 1, 1], [], []>} : vector<8x32xbf16>, vector<32x32xbf16>, vector<8x32xf32> -> vector<8x32xf32>
    %c0_62 = arith.constant 0 : index
    %c0_63 = arith.constant 0 : index
    %175 = vector.load %arg16[%c0_62, %c0_63] : memref<1x32xf32, #tpu.memory_space<vmem>>, vector<1x32xf32>
    %176 = vector.broadcast %175 : vector<1x32xf32> to vector<8x32xf32>
    %177 = arith.addf %174, %176 : vector<8x32xf32>
    %178 = arith.truncf %3 : vector<16x32xf32> to vector<16x32xbf16>
    %c0_64 = arith.constant 0 : index
    %c0_65 = arith.constant 0 : index
    %179 = vector.load %arg17[%c0_64, %c0_65] : memref<32x64xbf16, #tpu.memory_space<vmem>>, vector<32x64xbf16>
    %cst_66 = arith.constant dense<0.000000e+00> : vector<16x64xf32>
    %180 = tpu.matmul %178, %179, %cst_66 {dimension_numbers = #tpu.dot_dimension_numbers<[1], [0], [0], [1], [0, 0, 1, 1], [], []>} : vector<16x32xbf16>, vector<32x64xbf16>, vector<16x64xf32> -> vector<16x64xf32>
    %c0_67 = arith.constant 0 : index
    %c0_68 = arith.constant 0 : index
    %181 = vector.load %arg18[%c0_67, %c0_68] : memref<1x64xf32, #tpu.memory_space<vmem>>, vector<1x64xf32>
    %182 = vector.broadcast %181 : vector<1x64xf32> to vector<16x64xf32>
    %183 = arith.addf %180, %182 : vector<16x64xf32>
    %184 = vector.extract_strided_slice %183 {offsets = [0, 0], sizes = [16, 32], strides = [1, 1]} : vector<16x64xf32> to vector<16x32xf32>
    %185 = vector.extract_strided_slice %183 {offsets = [0, 32], sizes = [16, 32], strides = [1, 1]} : vector<16x64xf32> to vector<16x32xf32>
    %c0_69 = arith.constant 0 : index
    %c0_70 = arith.constant 0 : index
    %c0_71 = arith.constant 0 : index
    %186 = vector.load %arg4[%c0_69, %c0_70, %c0_71] : memref<1x1x16xi32, #tpu.memory_space<vmem>>, vector<1x1x16xi32>
    %187 = vector.shape_cast %186 : vector<1x1x16xi32> to vector<1x16xi32>
    %c0_i32_72 = arith.constant 0 : i32
    %188 = vector.broadcast %c0_i32_72 : i32 to vector<1x16xi32>
    %189 = arith.cmpi ne, %187, %188 : vector<1x16xi32>
    %cst_73 = arith.constant 0.000000e+00 : f32
    %cst_74 = arith.constant -1.000000e+30 : f32
    %190 = vector.broadcast %cst_73 : f32 to vector<1x16xf32>
    %191 = vector.broadcast %cst_74 : f32 to vector<1x16xf32>
    %192 = arith.select %189, %190, %191 : vector<1x16xi1>, vector<1x16xf32>
    %193 = vector.extract_strided_slice %177 {offsets = [0, 0], sizes = [8, 8], strides = [1, 1]} : vector<8x32xf32> to vector<8x8xf32>
    %cst_75 = arith.constant 0.353553385 : f32
    %194 = vector.broadcast %cst_75 : f32 to vector<8x8xf32>
    %195 = arith.mulf %193, %194 : vector<8x8xf32>
    %196 = arith.truncf %195 : vector<8x8xf32> to vector<8x8xbf16>
    %197 = vector.extract_strided_slice %184 {offsets = [0, 0], sizes = [16, 8], strides = [1, 1]} : vector<16x32xf32> to vector<16x8xf32>
    %198 = arith.truncf %197 : vector<16x8xf32> to vector<16x8xbf16>
    %199 = vector.extract_strided_slice %185 {offsets = [0, 0], sizes = [16, 8], strides = [1, 1]} : vector<16x32xf32> to vector<16x8xf32>
    %200 = arith.truncf %199 : vector<16x8xf32> to vector<16x8xbf16>
    %cst_76 = arith.constant dense<0.000000e+00> : vector<8x16xf32>
    %201 = tpu.matmul %196, %198, %cst_76 {dimension_numbers = #tpu.dot_dimension_numbers<[1], [1], [0], [0], [0, 0, 1, 0], [], []>} : vector<8x8xbf16>, vector<16x8xbf16>, vector<8x16xf32> -> vector<8x16xf32>
    %202 = vector.broadcast %192 : vector<1x16xf32> to vector<8x16xf32>
    %203 = arith.addf %201, %202 : vector<8x16xf32>
    %cst_77 = arith.constant dense<0xFF800000> : vector<8xf32>
    %204 = vector.multi_reduction <maximumf>, %203, %cst_77 [1] : vector<8x16xf32> to vector<8xf32>
    %205 = vector.shape_cast %204 : vector<8xf32> to vector<8x1xf32>
    %206 = vector.broadcast %205 : vector<8x1xf32> to vector<8x16xf32>
    %207 = arith.subf %203, %206 : vector<8x16xf32>
    %208 = math.exp %207 : vector<8x16xf32>
    %cst_78 = arith.constant dense<0.000000e+00> : vector<8xf32>
    %209 = vector.multi_reduction <add>, %208, %cst_78 [1] : vector<8x16xf32> to vector<8xf32>
    %210 = vector.shape_cast %209 : vector<8xf32> to vector<8x1xf32>
    %211 = tpu.reciprocal %210 {approx = true} : vector<8x1xf32> -> vector<8x1xf32>
    %212 = vector.broadcast %211 : vector<8x1xf32> to vector<8x16xf32>
    %213 = arith.mulf %208, %212 : vector<8x16xf32>
    %214 = arith.truncf %213 : vector<8x16xf32> to vector<8x16xbf16>
    %cst_79 = arith.constant dense<0.000000e+00> : vector<8x8xf32>
    %215 = tpu.matmul %214, %200, %cst_79 {dimension_numbers = #tpu.dot_dimension_numbers<[1], [0], [0], [1], [0, 0, 1, 1], [], []>} : vector<8x16xbf16>, vector<16x8xbf16>, vector<8x8xf32> -> vector<8x8xf32>
    %216 = vector.extract_strided_slice %177 {offsets = [0, 8], sizes = [8, 8], strides = [1, 1]} : vector<8x32xf32> to vector<8x8xf32>
    %cst_80 = arith.constant 0.353553385 : f32
    %217 = vector.broadcast %cst_80 : f32 to vector<8x8xf32>
    %218 = arith.mulf %216, %217 : vector<8x8xf32>
    %219 = arith.truncf %218 : vector<8x8xf32> to vector<8x8xbf16>
    %220 = vector.extract_strided_slice %184 {offsets = [0, 8], sizes = [16, 8], strides = [1, 1]} : vector<16x32xf32> to vector<16x8xf32>
    %221 = arith.truncf %220 : vector<16x8xf32> to vector<16x8xbf16>
    %222 = vector.extract_strided_slice %185 {offsets = [0, 8], sizes = [16, 8], strides = [1, 1]} : vector<16x32xf32> to vector<16x8xf32>
    %223 = arith.truncf %222 : vector<16x8xf32> to vector<16x8xbf16>
    %cst_81 = arith.constant dense<0.000000e+00> : vector<8x16xf32>
    %224 = tpu.matmul %219, %221, %cst_81 {dimension_numbers = #tpu.dot_dimension_numbers<[1], [1], [0], [0], [0, 0, 1, 0], [], []>} : vector<8x8xbf16>, vector<16x8xbf16>, vector<8x16xf32> -> vector<8x16xf32>
    %225 = vector.broadcast %192 : vector<1x16xf32> to vector<8x16xf32>
    %226 = arith.addf %224, %225 : vector<8x16xf32>
    %cst_82 = arith.constant dense<0xFF800000> : vector<8xf32>
    %227 = vector.multi_reduction <maximumf>, %226, %cst_82 [1] : vector<8x16xf32> to vector<8xf32>
    %228 = vector.shape_cast %227 : vector<8xf32> to vector<8x1xf32>
    %229 = vector.broadcast %228 : vector<8x1xf32> to vector<8x16xf32>
    %230 = arith.subf %226, %229 : vector<8x16xf32>
    %231 = math.exp %230 : vector<8x16xf32>
    %cst_83 = arith.constant dense<0.000000e+00> : vector<8xf32>
    %232 = vector.multi_reduction <add>, %231, %cst_83 [1] : vector<8x16xf32> to vector<8xf32>
    %233 = vector.shape_cast %232 : vector<8xf32> to vector<8x1xf32>
    %234 = tpu.reciprocal %233 {approx = true} : vector<8x1xf32> -> vector<8x1xf32>
    %235 = vector.broadcast %234 : vector<8x1xf32> to vector<8x16xf32>
    %236 = arith.mulf %231, %235 : vector<8x16xf32>
    %237 = arith.truncf %236 : vector<8x16xf32> to vector<8x16xbf16>
    %cst_84 = arith.constant dense<0.000000e+00> : vector<8x8xf32>
    %238 = tpu.matmul %237, %223, %cst_84 {dimension_numbers = #tpu.dot_dimension_numbers<[1], [0], [0], [1], [0, 0, 1, 1], [], []>} : vector<8x16xbf16>, vector<16x8xbf16>, vector<8x8xf32> -> vector<8x8xf32>
    %239 = vector.extract_strided_slice %177 {offsets = [0, 16], sizes = [8, 8], strides = [1, 1]} : vector<8x32xf32> to vector<8x8xf32>
    %cst_85 = arith.constant 0.353553385 : f32
    %240 = vector.broadcast %cst_85 : f32 to vector<8x8xf32>
    %241 = arith.mulf %239, %240 : vector<8x8xf32>
    %242 = arith.truncf %241 : vector<8x8xf32> to vector<8x8xbf16>
    %243 = vector.extract_strided_slice %184 {offsets = [0, 16], sizes = [16, 8], strides = [1, 1]} : vector<16x32xf32> to vector<16x8xf32>
    %244 = arith.truncf %243 : vector<16x8xf32> to vector<16x8xbf16>
    %245 = vector.extract_strided_slice %185 {offsets = [0, 16], sizes = [16, 8], strides = [1, 1]} : vector<16x32xf32> to vector<16x8xf32>
    %246 = arith.truncf %245 : vector<16x8xf32> to vector<16x8xbf16>
    %cst_86 = arith.constant dense<0.000000e+00> : vector<8x16xf32>
    %247 = tpu.matmul %242, %244, %cst_86 {dimension_numbers = #tpu.dot_dimension_numbers<[1], [1], [0], [0], [0, 0, 1, 0], [], []>} : vector<8x8xbf16>, vector<16x8xbf16>, vector<8x16xf32> -> vector<8x16xf32>
    %248 = vector.broadcast %192 : vector<1x16xf32> to vector<8x16xf32>
    %249 = arith.addf %247, %248 : vector<8x16xf32>
    %cst_87 = arith.constant dense<0xFF800000> : vector<8xf32>
    %250 = vector.multi_reduction <maximumf>, %249, %cst_87 [1] : vector<8x16xf32> to vector<8xf32>
    %251 = vector.shape_cast %250 : vector<8xf32> to vector<8x1xf32>
    %252 = vector.broadcast %251 : vector<8x1xf32> to vector<8x16xf32>
    %253 = arith.subf %249, %252 : vector<8x16xf32>
    %254 = math.exp %253 : vector<8x16xf32>
    %cst_88 = arith.constant dense<0.000000e+00> : vector<8xf32>
    %255 = vector.multi_reduction <add>, %254, %cst_88 [1] : vector<8x16xf32> to vector<8xf32>
    %256 = vector.shape_cast %255 : vector<8xf32> to vector<8x1xf32>
    %257 = tpu.reciprocal %256 {approx = true} : vector<8x1xf32> -> vector<8x1xf32>
    %258 = vector.broadcast %257 : vector<8x1xf32> to vector<8x16xf32>
    %259 = arith.mulf %254, %258 : vector<8x16xf32>
    %260 = arith.truncf %259 : vector<8x16xf32> to vector<8x16xbf16>
    %cst_89 = arith.constant dense<0.000000e+00> : vector<8x8xf32>
    %261 = tpu.matmul %260, %246, %cst_89 {dimension_numbers = #tpu.dot_dimension_numbers<[1], [0], [0], [1], [0, 0, 1, 1], [], []>} : vector<8x16xbf16>, vector<16x8xbf16>, vector<8x8xf32> -> vector<8x8xf32>
    %262 = vector.extract_strided_slice %177 {offsets = [0, 24], sizes = [8, 8], strides = [1, 1]} : vector<8x32xf32> to vector<8x8xf32>
    %cst_90 = arith.constant 0.353553385 : f32
    %263 = vector.broadcast %cst_90 : f32 to vector<8x8xf32>
    %264 = arith.mulf %262, %263 : vector<8x8xf32>
    %265 = arith.truncf %264 : vector<8x8xf32> to vector<8x8xbf16>
    %266 = vector.extract_strided_slice %184 {offsets = [0, 24], sizes = [16, 8], strides = [1, 1]} : vector<16x32xf32> to vector<16x8xf32>
    %267 = arith.truncf %266 : vector<16x8xf32> to vector<16x8xbf16>
    %268 = vector.extract_strided_slice %185 {offsets = [0, 24], sizes = [16, 8], strides = [1, 1]} : vector<16x32xf32> to vector<16x8xf32>
    %269 = arith.truncf %268 : vector<16x8xf32> to vector<16x8xbf16>
    %cst_91 = arith.constant dense<0.000000e+00> : vector<8x16xf32>
    %270 = tpu.matmul %265, %267, %cst_91 {dimension_numbers = #tpu.dot_dimension_numbers<[1], [1], [0], [0], [0, 0, 1, 0], [], []>} : vector<8x8xbf16>, vector<16x8xbf16>, vector<8x16xf32> -> vector<8x16xf32>
    %271 = vector.broadcast %192 : vector<1x16xf32> to vector<8x16xf32>
    %272 = arith.addf %270, %271 : vector<8x16xf32>
    %cst_92 = arith.constant dense<0xFF800000> : vector<8xf32>
    %273 = vector.multi_reduction <maximumf>, %272, %cst_92 [1] : vector<8x16xf32> to vector<8xf32>
    %274 = vector.shape_cast %273 : vector<8xf32> to vector<8x1xf32>
    %275 = vector.broadcast %274 : vector<8x1xf32> to vector<8x16xf32>
    %276 = arith.subf %272, %275 : vector<8x16xf32>
    %277 = math.exp %276 : vector<8x16xf32>
    %cst_93 = arith.constant dense<0.000000e+00> : vector<8xf32>
    %278 = vector.multi_reduction <add>, %277, %cst_93 [1] : vector<8x16xf32> to vector<8xf32>
    %279 = vector.shape_cast %278 : vector<8xf32> to vector<8x1xf32>
    %280 = tpu.reciprocal %279 {approx = true} : vector<8x1xf32> -> vector<8x1xf32>
    %281 = vector.broadcast %280 : vector<8x1xf32> to vector<8x16xf32>
    %282 = arith.mulf %277, %281 : vector<8x16xf32>
    %283 = arith.truncf %282 : vector<8x16xf32> to vector<8x16xbf16>
    %cst_94 = arith.constant dense<0.000000e+00> : vector<8x8xf32>
    %284 = tpu.matmul %283, %269, %cst_94 {dimension_numbers = #tpu.dot_dimension_numbers<[1], [0], [0], [1], [0, 0, 1, 1], [], []>} : vector<8x16xbf16>, vector<16x8xbf16>, vector<8x8xf32> -> vector<8x8xf32>
    %285 = tpu.concatenate %215, %238, %261, %284 in 1 : vector<8x8xf32>, vector<8x8xf32>, vector<8x8xf32>, vector<8x8xf32> -> vector<8x32xf32>
    %286 = arith.truncf %285 : vector<8x32xf32> to vector<8x32xbf16>
    %c0_95 = arith.constant 0 : index
    %c0_96 = arith.constant 0 : index
    %287 = vector.load %arg19[%c0_95, %c0_96] : memref<32x32xbf16, #tpu.memory_space<vmem>>, vector<32x32xbf16>
    %cst_97 = arith.constant dense<0.000000e+00> : vector<8x32xf32>
    %288 = tpu.matmul %286, %287, %cst_97 {dimension_numbers = #tpu.dot_dimension_numbers<[1], [0], [0], [1], [0, 0, 1, 1], [], []>} : vector<8x32xbf16>, vector<32x32xbf16>, vector<8x32xf32> -> vector<8x32xf32>
    %c0_98 = arith.constant 0 : index
    %c0_99 = arith.constant 0 : index
    %289 = vector.load %arg20[%c0_98, %c0_99] : memref<1x32xf32, #tpu.memory_space<vmem>>, vector<1x32xf32>
    %290 = vector.broadcast %289 : vector<1x32xf32> to vector<8x32xf32>
    %291 = arith.addf %288, %290 : vector<8x32xf32>
    %292 = arith.addf %147, %291 : vector<8x32xf32>
    %c0_100 = arith.constant 0 : index
    %c0_101 = arith.constant 0 : index
    %293 = vector.load %arg9[%c0_100, %c0_101] : memref<1x32xf32, #tpu.memory_space<vmem>>, vector<1x32xf32>
    %c0_102 = arith.constant 0 : index
    %c0_103 = arith.constant 0 : index
    %294 = vector.load %arg10[%c0_102, %c0_103] : memref<1x32xf32, #tpu.memory_space<vmem>>, vector<1x32xf32>
    %cst_104 = arith.constant dense<0.000000e+00> : vector<8xf32>
    %295 = vector.multi_reduction <add>, %292, %cst_104 [1] : vector<8x32xf32> to vector<8xf32>
    %296 = vector.shape_cast %295 : vector<8xf32> to vector<8x1xf32>
    %cst_105 = arith.constant 3.200000e+01 : f32
    %297 = vector.broadcast %cst_105 : f32 to vector<8x1xf32>
    %298 = arith.divf %296, %297 : vector<8x1xf32>
    %299 = vector.broadcast %298 : vector<8x1xf32> to vector<8x32xf32>
    %300 = arith.subf %292, %299 : vector<8x32xf32>
    %301 = arith.mulf %300, %300 : vector<8x32xf32>
    %cst_106 = arith.constant dense<0.000000e+00> : vector<8xf32>
    %302 = vector.multi_reduction <add>, %301, %cst_106 [1] : vector<8x32xf32> to vector<8xf32>
    %303 = vector.shape_cast %302 : vector<8xf32> to vector<8x1xf32>
    %cst_107 = arith.constant 3.200000e+01 : f32
    %304 = vector.broadcast %cst_107 : f32 to vector<8x1xf32>
    %305 = arith.divf %303, %304 : vector<8x1xf32>
    %306 = vector.broadcast %298 : vector<8x1xf32> to vector<8x32xf32>
    %307 = arith.subf %292, %306 : vector<8x32xf32>
    %cst_108 = arith.constant 9.99999974E-6 : f32
    %308 = vector.broadcast %cst_108 : f32 to vector<8x1xf32>
    %309 = arith.addf %305, %308 : vector<8x1xf32>
    %310 = math.rsqrt %309 : vector<8x1xf32>
    %311 = vector.broadcast %310 : vector<8x1xf32> to vector<8x32xf32>
    %312 = arith.mulf %307, %311 : vector<8x32xf32>
    %313 = vector.broadcast %293 : vector<1x32xf32> to vector<8x32xf32>
    %314 = arith.mulf %312, %313 : vector<8x32xf32>
    %315 = vector.broadcast %294 : vector<1x32xf32> to vector<8x32xf32>
    %316 = arith.addf %314, %315 : vector<8x32xf32>
    %317 = arith.truncf %316 : vector<8x32xf32> to vector<8x32xbf16>
    %c0_109 = arith.constant 0 : index
    %c0_110 = arith.constant 0 : index
    %318 = vector.load %arg21[%c0_109, %c0_110] : memref<32x128xbf16, #tpu.memory_space<vmem>>, vector<32x128xbf16>
    %cst_111 = arith.constant dense<0.000000e+00> : vector<8x128xf32>
    %319 = tpu.matmul %317, %318, %cst_111 {dimension_numbers = #tpu.dot_dimension_numbers<[1], [0], [0], [1], [0, 0, 1, 1], [], []>} : vector<8x32xbf16>, vector<32x128xbf16>, vector<8x128xf32> -> vector<8x128xf32>
    %c0_112 = arith.constant 0 : index
    %c0_113 = arith.constant 0 : index
    %320 = vector.load %arg22[%c0_112, %c0_113] : memref<1x128xf32, #tpu.memory_space<vmem>>, vector<1x128xf32>
    %321 = vector.broadcast %320 : vector<1x128xf32> to vector<8x128xf32>
    %322 = arith.addf %319, %321 : vector<8x128xf32>
    %cst_114 = arith.constant 0.000000e+00 : f32
    %323 = vector.broadcast %cst_114 : f32 to vector<8x128xf32>
    %324 = arith.maximumf %322, %323 : vector<8x128xf32>
    %325 = arith.truncf %324 : vector<8x128xf32> to vector<8x128xbf16>
    %c0_115 = arith.constant 0 : index
    %c0_116 = arith.constant 0 : index
    %326 = vector.load %arg23[%c0_115, %c0_116] : memref<128x32xbf16, #tpu.memory_space<vmem>>, vector<128x32xbf16>
    %cst_117 = arith.constant dense<0.000000e+00> : vector<8x32xf32>
    %327 = tpu.matmul %325, %326, %cst_117 {dimension_numbers = #tpu.dot_dimension_numbers<[1], [0], [0], [1], [0, 0, 1, 1], [], []>} : vector<8x128xbf16>, vector<128x32xbf16>, vector<8x32xf32> -> vector<8x32xf32>
    %c0_118 = arith.constant 0 : index
    %c0_119 = arith.constant 0 : index
    %328 = vector.load %arg24[%c0_118, %c0_119] : memref<1x32xf32, #tpu.memory_space<vmem>>, vector<1x32xf32>
    %329 = vector.broadcast %328 : vector<1x32xf32> to vector<8x32xf32>
    %330 = arith.addf %327, %329 : vector<8x32xf32>
    %331 = arith.addf %292, %330 : vector<8x32xf32>
    %c0_120 = arith.constant 0 : index
    %c0_121 = arith.constant 0 : index
    %c0_122 = arith.constant 0 : index
    %332 = vector.load %arg25[%c0_120, %c0_121, %c0_122] : memref<1x8x32xf32, #tpu.memory_space<vmem>>, vector<1x8x32xf32>
    %333 = vector.shape_cast %332 : vector<1x8x32xf32> to vector<8x32xf32>
    %334 = vector.shape_cast %331 : vector<8x32xf32> to vector<1x8x32xf32>
    tpu.vector_store %arg25[%c0_120, %c0_121, %c0_122], %334 {strides = array<i32>} : memref<1x8x32xf32, #tpu.memory_space<vmem>>, vector<1x8x32xf32>,
    return
  }
  func.func @transform_0(%arg0: i32) -> (i32, i32, i32) {
    %c0_i32 = arith.constant 0 : i32
    %c0_i32_0 = arith.constant 0 : i32
    %c0_i32_1 = arith.constant 0 : i32
    return %arg0, %c0_i32, %c0_i32_0 : i32, i32, i32
  }
  func.func @transform_1(%arg0: i32) -> (i32, i32, i32) {
    %c0_i32 = arith.constant 0 : i32
    %c0_i32_0 = arith.constant 0 : i32
    %c0_i32_1 = arith.constant 0 : i32
    return %arg0, %c0_i32, %c0_i32_0 : i32, i32, i32
  }
  func.func @transform_2(%arg0: i32) -> (i32, i32, i32) {
    %c0_i32 = arith.constant 0 : i32
    %c0_i32_0 = arith.constant 0 : i32
    %c0_i32_1 = arith.constant 0 : i32
    return %arg0, %c0_i32, %c0_i32_0 : i32, i32, i32
  }
  func.func @transform_3(%arg0: i32) -> (i32, i32, i32) {
    %c0_i32 = arith.constant 0 : i32
    %c0_i32_0 = arith.constant 0 : i32
    %c0_i32_1 = arith.constant 0 : i32
    return %arg0, %c0_i32, %c0_i32_0 : i32, i32, i32
  }
  func.func @transform_4(%arg0: i32) -> (i32, i32) {
    %c0_i32 = arith.constant 0 : i32
    %c0_i32_0 = arith.constant 0 : i32
    %c0_i32_1 = arith.constant 0 : i32
    return %c0_i32, %c0_i32_0 : i32, i32
  }
  func.func @transform_5(%arg0: i32) -> (i32, i32) {
    %c0_i32 = arith.constant 0 : i32
    %c0_i32_0 = arith.constant 0 : i32
    %c0_i32_1 = arith.constant 0 : i32
    return %c0_i32, %c0_i32_0 : i32, i32
  }
  func.func @transform_6(%arg0: i32) -> (i32, i32) {
    %c0_i32 = arith.constant 0 : i32
    %c0_i32_0 = arith.constant 0 : i32
    %c0_i32_1 = arith.constant 0 : i32
    return %c0_i32, %c0_i32_0 : i32, i32
  }
  func.func @transform_7(%arg0: i32) -> (i32, i32) {
    %c0_i32 = arith.constant 0 : i32
    %c0_i32_0 = arith.constant 0 : i32
    %c0_i32_1 = arith.constant 0 : i32
    return %c0_i32, %c0_i32_0 : i32, i32
  }
  func.func @transform_8(%arg0: i32) -> (i32, i32) {
    %c0_i32 = arith.constant 0 : i32
    %c0_i32_0 = arith.constant 0 : i32
    %c0_i32_1 = arith.constant 0 : i32
    return %c0_i32, %c0_i32_0 : i32, i32
  }
  func.func @transform_9(%arg0: i32) -> (i32, i32) {
    %c0_i32 = arith.constant 0 : i32
    %c0_i32_0 = arith.constant 0 : i32
    %c0_i32_1 = arith.constant 0 : i32
    return %c0_i32, %c0_i32_0 : i32, i32
  }
  func.func @transform_10(%arg0: i32) -> (i32, i32) {
    %c0_i32 = arith.constant 0 : i32
    %c0_i32_0 = arith.constant 0 : i32
    %c0_i32_1 = arith.constant 0 : i32
    return %c0_i32, %c0_i32_0 : i32, i32
  }
  func.func @transform_11(%arg0: i32) -> (i32, i32) {
    %c0_i32 = arith.constant 0 : i32
    %c0_i32_0 = arith.constant 0 : i32
    %c0_i32_1 = arith.constant 0 : i32
    return %c0_i32, %c0_i32_0 : i32, i32
  }
  func.func @transform_12(%arg0: i32) -> (i32, i32) {
    %c0_i32 = arith.constant 0 : i32
    %c0_i32_0 = arith.constant 0 : i32
    %c0_i32_1 = arith.constant 0 : i32
    return %c0_i32, %c0_i32_0 : i32, i32
  }
  func.func @transform_13(%arg0: i32) -> (i32, i32) {
    %c0_i32 = arith.constant 0 : i32
    %c0_i32_0 = arith.constant 0 : i32
    %c0_i32_1 = arith.constant 0 : i32
    return %c0_i32, %c0_i32_0 : i32, i32
  }
  func.func @transform_14(%arg0: i32) -> (i32, i32) {
    %c0_i32 = arith.constant 0 : i32
    %c0_i32_0 = arith.constant 0 : i32
    %c0_i32_1 = arith.constant 0 : i32
    return %c0_i32, %c0_i32_0 : i32, i32
  }
  func.func @transform_15(%arg0: i32) -> (i32, i32) {
    %c0_i32 = arith.constant 0 : i32
    %c0_i32_0 = arith.constant 0 : i32
    %c0_i32_1 = arith.constant 0 : i32
    return %c0_i32, %c0_i32_0 : i32, i32
  }
  func.func @transform_16(%arg0: i32) -> (i32, i32) {
    %c0_i32 = arith.constant 0 : i32
    %c0_i32_0 = arith.constant 0 : i32
    %c0_i32_1 = arith.constant 0 : i32
    return %c0_i32, %c0_i32_0 : i32, i32
  }
  func.func @transform_17(%arg0: i32) -> (i32, i32) {
    %c0_i32 = arith.constant 0 : i32
    %c0_i32_0 = arith.constant 0 : i32
    %c0_i32_1 = arith.constant 0 : i32
    return %c0_i32, %c0_i32_0 : i32, i32
  }
  func.func @transform_18(%arg0: i32) -> (i32, i32) {
    %c0_i32 = arith.constant 0 : i32
    %c0_i32_0 = arith.constant 0 : i32
    %c0_i32_1 = arith.constant 0 : i32
    return %c0_i32, %c0_i32_0 : i32, i32
  }
  func.func @transform_19(%arg0: i32) -> (i32, i32) {
    %c0_i32 = arith.constant 0 : i32
    %c0_i32_0 = arith.constant 0 : i32
    %c0_i32_1 = arith.constant 0 : i32
    return %c0_i32, %c0_i32_0 : i32, i32
  }
  func.func @transform_20(%arg0: i32) -> (i32, i32) {
    %c0_i32 = arith.constant 0 : i32
    %c0_i32_0 = arith.constant 0 : i32
    %c0_i32_1 = arith.constant 0 : i32
    return %c0_i32, %c0_i32_0 : i32, i32
  }
  func.func @transform_21(%arg0: i32) -> (i32, i32) {
    %c0_i32 = arith.constant 0 : i32
    %c0_i32_0 = arith.constant 0 : i32
    %c0_i32_1 = arith.constant 0 : i32
    return %c0_i32, %c0_i32_0 : i32, i32
  }
  func.func @transform_22(%arg0: i32) -> (i32, i32) {
    %c0_i32 = arith.constant 0 : i32
    %c0_i32_0 = arith.constant 0 : i32
    %c0_i32_1 = arith.constant 0 : i32
    return %c0_i32, %c0_i32_0 : i32, i32
  }
  func.func @transform_23(%arg0: i32) -> (i32, i32) {
    %c0_i32 = arith.constant 0 : i32
    %c0_i32_0 = arith.constant 0 : i32
    %c0_i32_1 = arith.constant 0 : i32
    return %c0_i32, %c0_i32_0 : i32, i32
  }
  func.func @transform_24(%arg0: i32) -> (i32, i32, i32) {
    %c0_i32 = arith.constant 0 : i32
    %c0_i32_0 = arith.constant 0 : i32
    %c0_i32_1 = arith.constant 0 : i32
    return %arg0, %c0_i32, %c0_i32_0 : i32, i32, i32
  }
}

</mosaic_0001>

<bundles_post_ra>
// kernel: tpu_custom_call.1
= control target key start
LH: loop header
LB: loop body
LE: loop exit
PB: predicated region body
PF: predicated region fallthrough
CT: control target
= control target key end

     0   :  { %s4661_s0 = inlined_call_operand.vmem [shape: f32[2,8,32], index: 0, kind: input, shape index: {}]   ;;  %s4662_s1 = inlined_call_operand.vmem [shape: f32[2,16,32], index: 1, kind: input, shape index: {}]   ;;  %s4663_s2 = inlined_call_operand.hbm [shape: s32[2,1,8], index: 2, kind: input, shape index: {}]   ;;  %s4664_s3 = inlined_call_operand.hbm [shape: s32[2,1,16], index: 3, kind: input, shape index: {}]   ;;  %s4665_s4 = inlined_call_operand.hbm [shape: f32[1,32], index: 4, kind: input, shape index: {}]   ;;  %s4666_s5 = inlined_call_operand.hbm [shape: f32[1,32], index: 5, kind: input, shape index: {}]   ;;  %s4667_s6 = inlined_call_operand.hbm [shape: f32[1,32], index: 6, kind: input, shape index: {}]   ;;  %s4668_s7 = inlined_call_operand.hbm [shape: f32[1,32], index: 7, kind: input, shape index: {}]   ;;  %s4669_s8 = inlined_call_operand.hbm [shape: f32[1,32], index: 8, kind: input, shape index: {}]   ;;  %s4670_s9 = inlined_call_operand.hbm [shape: f32[1,32], index: 9, kind: input, shape index: {}]   ;;  %s4671_s10 = inlined_call_operand.vmem [shape: bf16[32,96], index: 10, kind: input, shape index: {}]   ;;  %s4672_s11 = inlined_call_operand.hbm [shape: f32[1,96], index: 11, kind: input, shape index: {}]   ;;  %s4673_s12 = inlined_call_operand.vmem [shape: bf16[32,32], index: 12, kind: input, shape index: {}]   ;;  %s4674_s13 = inlined_call_operand.hbm [shape: f32[1,32], index: 13, kind: input, shape index: {}]   ;;  %s4675_s14 = inlined_call_operand.vmem [shape: bf16[32,32], index: 14, kind: input, shape index: {}]   ;;  %s4676_s15 = inlined_call_operand.hbm [shape: f32[1,32], index: 15, kind: input, shape index: {}]   ;;  %s4677_s16 = inlined_call_operand.hbm [shape: bf16[32,64], index: 16, kind: input, shape index: {}]   ;;  %s4678_s17 = inlined_call_operand.hbm [shape: f32[1,64], index: 17, kind: input, shape index: {}]   ;;  %s4679_s18 = inlined_call_operand.hbm [shape: bf16[32,32], index: 18, kind: input, shape index: {}]   ;;  %s4680_s19 = inlined_call_operand.vmem [shape: f32[1,32], index: 19, kind: input, shape index: {}]   ;;  %s4681_s20 = inlined_call_operand.hbm [shape: bf16[32,128], index: 20, kind: input, shape index: {}]   ;;  %s4682_s21 = inlined_call_operand.vmem [shape: f32[1,128], index: 21, kind: input, shape index: {}]   ;;  %s4683_s22 = inlined_call_operand.vmem [shape: bf16[128,32], index: 22, kind: input, shape index: {}]   ;;  %s4684_s23 = inlined_call_operand.vmem [shape: f32[1,32], index: 23, kind: input, shape index: {}]   ;;  %s4685_s24 = inlined_call_operand.hbm [shape: f32[2,8,32], index: 24, kind: output, shape index: {}]  }
   0x1   :  { %4699 = sst [smem:[#allocation39_spill]] %s4661_s0 }
   0x2   :  { %4700 = sst [smem:[#allocation40_spill]] %s4662_s1 }
   0x3   :  { %4701 = sst [smem:[#allocation41_spill]] %s4663_s2 }
   0x4   :  { %4702 = sst [smem:[#allocation42_spill]] %s4664_s3 }
   0x5   :  { %4703 = sst [smem:[#allocation43_spill]] %s4665_s4 }
   0x6   :  { %4704 = sst [smem:[#allocation44_spill]] %s4666_s5 }
   0x7   :  { %4705 = sst [smem:[#allocation45_spill]] %s4667_s6 }
   0x8   :  { %4706 = sst [smem:[#allocation46_spill]] %s4668_s7 }
   0x9   :  { %4707 = sst [smem:[#allocation47_spill]] %s4669_s8 }
   0xa   :  { %4708 = sst [smem:[#allocation48_spill]] %s4670_s9 }
   0xb   :  { %4709 = sst [smem:[#allocation49_spill]] %s4672_s11 }
   0xc   :  { %4710 = sst [smem:[#allocation50_spill]] %s4674_s13 }
   0xd   :  { %4711 = sst [smem:[#allocation51_spill]] %s4676_s15 }
   0xe   :  { %4712 = sst [smem:[#allocation52_spill]] %s4677_s16 }
   0xf   :  { %4713 = sst [smem:[#allocation53_spill]] %s4678_s17 }
  0x10   :  { %4714 = sst [smem:[#allocation54_spill]] %s4679_s18 }
  0x11   :  { %4715 = sst [smem:[#allocation55_spill]] %s4681_s20 }
  0x12   :  { %4716 = sst [smem:[#allocation56_spill]] %s4682_s21 }
  0x13   :  { %4717 = sst [smem:[#allocation57_spill]] %s4684_s23 }
  0x14   :  { %4718 = sst [smem:[#allocation58_spill]] %s4685_s24 }
  0x15   :  { %29 = vsyncpa [#allocation3], 0 }
  0x16   :  { %31 = vsyncpa [#allocation3 + $0x1], 0 }
  0x17   :  { %32 = vsyncpa [#allocation6], 0 }
  0x18   :  { %34 = vsyncpa [#allocation6 + $0x1], 0 }
  0x19   :  { %35 = vsyncpa [#allocation9], 0 }
  0x1a   :  { %36 = vsyncpa [#allocation12], 0 }
  0x1b   :  { %37 = vsyncpa [#allocation15], 0 }
  0x1c   :  { %38 = vsyncpa [#allocation18], 0 }
  0x1d   :  { %39 = vsyncpa [#allocation21], 0 }
  0x1e   :  { %40 = vsyncpa [#allocation24], 0 }
  0x1f   :  { %41 = vsyncpa [#allocation4], 0 }
  0x20   :  { %43 = vsyncpa [#allocation4 + $0x1], 0  ;;  %s4015_s5 = smov 0   ;;  %s4017_s26 = smov 0  }
  0x21   :  { %s4019_s27 = smov 0   ;;  %s4021_s28 = smov 0  }
  0x22 LB: > { %4719 = sst [smem:[#allocation37_spill]] %s3849_s27  ;;  %s3855_s6 = smov [#allocation7]   ;;  %s3853_s28 = sphi %s4021_s28, %s4777_s28   ;;  %s3849_s27 = sphi %s4019_s27, %s4774_s27   ;;  %s3845_s26 = sphi %s4017_s26, %s4776_s26   ;;  %s3841_s5 = sphi %s4015_s5, %s4775_s5  }
  0x23   : > { %s617_s2 = sshll.u32 %s3855_s6, 4  ;;  %s4036_s29 = sadd.s32 4294967295, %s3853_s28   ;;  %s618_s2 = int_to_ptr.vmem [resolvable:$true] %s617_s2 }
  0x24   : > { %p2786_p0 = scmp.ge.s32.totalorder %s3853_s28, 1  ;;  %p4689_p1 = scmp.eq.s32.totalorder %s4036_s29, 0 }
  0x25   : > { %p604_p2 = scmp.lt.s32.totalorder %s3853_s28, 3  ;;  %s3856_s7 = smov [#allocation8]  }
  0x26   : > { %s628_s30 = sshll.u32 %s3856_s7, 4  ;;  %s3857_s3 = smov [#allocation11]   ;;  %s4048_s30 = int_to_ptr.vmem [resolvable:$true] %s628_s30 }
  0x27   : > { %p4041_p3 = pnand %p2786_p0, %p604_p2  ;;  %s650_s25 = sshll.u32 %s3857_s3, 4  ;;  %s4056_s25 = int_to_ptr.vmem [resolvable:$true] %s650_s25 }
  0x28   : > { %s3858_s4 = smov [#allocation14]   ;;  %s3374_s7 = scalar_lea.vmem %s618_s2, 16 }
  0x29   : > { %s4720_s0 = scalar_select %p4041_p3, 1, 0 }
  0x2a   : > { %p3162_p5 = pneg %p4041_p3  ;;  %s4058_s1 = sshll.u32 %s3858_s4, 4  ;;  %s673_s1 = int_to_ptr.vmem [resolvable:$true] %s4058_s1 }
  0x2b   : > { %p3375_p8 = scmp.ne.s32.totalorder %s618_s2, %s3374_s7  ;;  %s3381_s3 = scalar_lea.vmem %s618_s2, 32 }
  0x2c   : > { %p4052_p6 = pnand %p3162_p5, %p4689_p1  ;;  %p3382_p11 = scmp.lt.s32.totalorder %s618_s2, %s618_s2 }
  0x2d   : > { %p3383_p12 = scmp.lt.s32.totalorder %s3381_s3, %s3374_s7 }
  0x2e   : > { %p4062_p7 = pneg %p4052_p6 }
  0x2f   : > { %p3384_p13 = por %p3383_p12, %p3382_p11 }
  0x30   : > { %p3377_p9 = pnand %p3375_p8, %p4062_p7 }
  0x32   : > { %p3378_p10 = pneg %p3377_p9 }
  0x34   : > { %p3385_p0 = pnand %p3384_p13, %p3378_p10 }
  0x36   : > { %3388 = shalt.err (!%p3385_p0)
}
  0x37   : > { %s4723_s23 = sld [smem:[#allocation43_spill]]  ;;  %s3400_s21 = scalar_lea.vmem %s4048_s30, 16 }
  0x38   : > { %p3401_p2 = scmp.ne.s32.totalorder %s4048_s30, %s3400_s21  ;;  %s3407_s7 = scalar_lea.vmem %s4048_s30, 32 }
  0x39   : > { %p3408_p9 = scmp.lt.s32.totalorder %s4048_s30, %s4048_s30  ;;  %p3409_p10 = scmp.lt.s32.totalorder %s3407_s7, %s3400_s21 }
  0x3a   : > { %p3403_p5 = pnand %p3401_p2, %p4062_p7 }
  0x3b   : > { %p3410_p11 = por %p3409_p10, %p3408_p9 }
  0x3c   : > { %p3404_p8 = pneg %p3403_p5 }
  0x3d   : > { %3165 = dma.hbm_to_vmem [thread:$0]  (!%p4052_p6), %s4723_s23, 16, %s618_s2, [#allocation6]  }
  0x3e   : > { %p3411_p12 = pnand %p3410_p11, %p3404_p8 }
  0x40   : > { %3414 = shalt.err (!%p3411_p12)
}
  0x41   : > { %s4724_s4 = sld [smem:[#allocation44_spill]]  ;;  %s3426_s23 = scalar_lea.vmem %s4056_s25, 16 }
  0x42   : > { %p3427_p13 = scmp.ne.s32.totalorder %s4056_s25, %s3426_s23  ;;  %s3433_s21 = scalar_lea.vmem %s4056_s25, 32 }
  0x43   : > { %p3434_p5 = scmp.lt.s32.totalorder %s4056_s25, %s4056_s25  ;;  %p3435_p8 = scmp.lt.s32.totalorder %s3433_s21, %s3426_s23 }
  0x44   : > { %p3429_p0 = pnand %p3427_p13, %p4062_p7 }
  0x45   : > { %p3436_p9 = por %p3435_p8, %p3434_p5 }
  0x46   : > { %p3430_p2 = pneg %p3429_p0 }
  0x47   : > { %3168 = dma.hbm_to_vmem [thread:$0]  (!%p4052_p6), %s4724_s4, 16, %s4048_s30, [#allocation9]  }
  0x48   : > { %p3437_p10 = pnand %p3436_p9, %p3430_p2 }
  0x4a   : > { %3440 = shalt.err (!%p3437_p10)
}
  0x4b   : > { %s4725_s24 = sld [smem:[#allocation46_spill]]  ;;  %s3859_s30 = smov [#allocation17]  }
  0x4c   : > { %s700_s3 = sshll.u32 %s3859_s30, 4  ;;  %s3452_s4 = scalar_lea.vmem %s673_s1, 16  ;;  %s701_s3 = int_to_ptr.vmem [resolvable:$true] %s700_s3 }
  0x4d   : > { %p3453_p11 = scmp.ne.s32.totalorder %s673_s1, %s3452_s4  ;;  %s3459_s23 = scalar_lea.vmem %s673_s1, 32 }
  0x4e   : > { %p3460_p0 = scmp.lt.s32.totalorder %s673_s1, %s673_s1  ;;  %p3461_p2 = scmp.lt.s32.totalorder %s3459_s23, %s3452_s4 }
  0x4f   : > { %p3455_p12 = pnand %p3453_p11, %p4062_p7 }
  0x50   : > { %p3462_p5 = por %p3461_p2, %p3460_p0 }
  0x51   : > { %3174 = dma.hbm_to_vmem [thread:$0]  (!%p4052_p6), %s4725_s24, 16, %s4056_s25, [#allocation12]  }
  0x52   : > { %p3456_p13 = pneg %p3455_p12 }
  0x54   : > { %p3463_p8 = pnand %p3462_p5, %p3456_p13 }
  0x56   : > { %3466 = shalt.err (!%p3463_p8)
}
  0x57   : > { %s4726_s9 = sld [smem:[#allocation48_spill]]  ;;  %s3478_s25 = scalar_lea.vmem %s701_s3, 16 }
  0x58   : > { %p3479_p9 = scmp.ne.s32.totalorder %s701_s3, %s3478_s25  ;;  %s3485_s7 = scalar_lea.vmem %s701_s3, 32 }
  0x59   : > { %p3486_p12 = scmp.lt.s32.totalorder %s701_s3, %s701_s3  ;;  %p3487_p4 = scmp.lt.s32.totalorder %s3485_s7, %s3478_s25 }
  0x5a   : > { %p3481_p10 = pnand %p3479_p9, %p4062_p7 }
  0x5b   : > { %p3488_p1 = por %p3487_p4, %p3486_p12 }
  0x5c   : > { %p3482_p11 = pneg %p3481_p10 }
  0x5d   : > { %3180 = dma.hbm_to_vmem [thread:$0]  (!%p4052_p6), %s4726_s9, 16, %s673_s1, [#allocation15]  }
  0x5e   : > { %p3489_p0 = pnand %p3488_p1, %p3482_p11 }
  0x60   : > { %3492 = shalt.err (!%p3489_p0)
}
  0x61   : > { %s4727_s13 = sld [smem:[#allocation50_spill]]  ;;  %s3860_s1 = smov [#allocation20]  }
  0x62   : > { %s724_s4 = sshll.u32 %s3860_s1, 4  ;;  %s725_s4 = int_to_ptr.vmem [resolvable:$true] %s724_s4 }
  0x63   : > { %s3504_s23 = scalar_lea.vmem %s725_s4, 256  ;;  %p3512_p8 = scmp.lt.s32.totalorder %s725_s4, %s725_s4 }
  0x64   : > { %p3505_p13 = scmp.ne.s32.totalorder %s725_s4, %s3504_s23  ;;  %p3513_p9 = scmp.lt.s32.totalorder %s3504_s23, %s3504_s23 }
  0x66   : > { %p3507_p2 = pnand %p3505_p13, %p4062_p7  ;;  %p3514_p4 = por %p3513_p9, %p3512_p8 }
  0x67   : > { %3186 = dma.hbm_to_vmem [thread:$0]  (!%p4052_p6), %s4727_s13, 16, %s701_s3, [#allocation18]  }
  0x68   : > { %p3508_p5 = pneg %p3507_p2 }
  0x6a   : > { %p3515_p1 = pnand %p3514_p4, %p3508_p5 }
  0x6c   : > { %3518 = shalt.err (!%p3515_p1)
}
  0x6d   : > { %s4690_s21 = smov 64   ;;  %s4691_s2 = smov 4  }
  0x6e   : > { %s4728_s16 = sld [smem:[#allocation52_spill]]  ;;  %s3863_s7 = smov [#allocation23]  }
  0x6f   : > { %s748_s24 = sshll.u32 %s3863_s7, 4  ;;  %s3864_s30 = smov [#allocation10]   ;;  %s749_s24 = int_to_ptr.vmem [resolvable:$true] %s748_s24 }
  0x70   : > { %s639_s1 = sshll.u32 %s3864_s30, 4  ;;  %s3530_s23 = scalar_lea.vmem %s749_s24, 256  ;;  %s640_s1 = int_to_ptr.vmem [resolvable:$true] %s639_s1 }
  0x71   : > { %p3531_p10 = scmp.ne.s32.totalorder %s749_s24, %s3530_s23  ;;  %p3538_p0 = scmp.lt.s32.totalorder %s749_s24, %s749_s24 }
  0x72   : > { %p3539_p13 = scmp.lt.s32.totalorder %s3530_s23, %s3530_s23 }
  0x73   : > { %p3533_p11 = pnand %p3531_p10, %p4062_p7 }
  0x74   : > { %3192 = dma.hbm_to_vmem [thread:$0]  (!%p4052_p6), %s4728_s16, 256, %s725_s4, [#allocation21], %s4690_s21, %s4690_s21, %s4691_s2  }
  0x75   : > { %p3534_p12 = pneg %p3533_p11  ;;  %p3540_p2 = por %p3539_p13, %p3538_p0 }
  0x77   : > { %p3541_p5 = pnand %p3540_p2, %p3534_p12 }
  0x79   : > { %3544 = shalt.err (!%p3541_p5)
}
  0x7a   : > { %s4729_s18 = sld [smem:[#allocation54_spill]]  ;;  %s3556_s25 = scalar_lea.vmem %s640_s1, 16 }
  0x7b   : > { %p3557_p8 = scmp.ne.s32.totalorder %s640_s1, %s3556_s25  ;;  %s3563_s7 = scalar_lea.vmem %s640_s1, 32 }
  0x7c   : > { %p3564_p1 = scmp.lt.s32.totalorder %s640_s1, %s640_s1  ;;  %p3565_p10 = scmp.lt.s32.totalorder %s3563_s7, %s3556_s25 }
  0x7d   : > { %p3559_p9 = pnand %p3557_p8, %p4062_p7 }
  0x7e   : > { %p3566_p11 = por %p3565_p10, %p3564_p1 }
  0x7f   : > { %p3560_p4 = pneg %p3559_p9 }
  0x80   : > { %3198 = dma.hbm_to_vmem [thread:$0]  (!%p4052_p6), %s4729_s18, 256, %s749_s24, [#allocation24], %s4690_s21, %s4690_s21, %s4691_s2  }
  0x81   : > { %p3567_p12 = pnand %p3566_p11, %p3560_p4 }
  0x83   : > { %3570 = shalt.err (!%p3567_p12)
}
  0x84   : > { %s4730_s9 = sld [smem:[#allocation45_spill]]  ;;  %s3865_s4 = smov [#allocation13]  }
  0x85   : > { %s661_s24 = sshll.u32 %s3865_s4, 4  ;;  %s3866_s3 = smov [#allocation16]   ;;  %s662_s24 = int_to_ptr.vmem [resolvable:$true] %s661_s24 }
  0x86   : > { %s686_s21 = sshll.u32 %s3866_s3, 4  ;;  %s3582_s2 = scalar_lea.vmem %s662_s24, 16  ;;  %s687_s21 = int_to_ptr.vmem [resolvable:$true] %s686_s21 }
  0x87   : > { %p3583_p0 = scmp.ne.s32.totalorder %s662_s24, %s3582_s2  ;;  %s3589_s25 = scalar_lea.vmem %s662_s24, 32 }
  0x88   : > { %p3590_p5 = scmp.lt.s32.totalorder %s662_s24, %s662_s24  ;;  %p3591_p8 = scmp.lt.s32.totalorder %s3589_s25, %s3582_s2 }
  0x89   : > { %p3585_p13 = pnand %p3583_p0, %p4062_p7 }
  0x8a   : > { %3171 = dma.hbm_to_vmem [thread:$0]  (!%p4052_p6), %s4730_s9, 16, %s640_s1, [#allocation9]  }
  0x8b   : > { %p3586_p2 = pneg %p3585_p13  ;;  %p3592_p9 = por %p3591_p8, %p3590_p5 }
  0x8d   : > { %p3593_p4 = pnand %p3592_p9, %p3586_p2 }
  0x8f   : > { %3596 = shalt.err (!%p3593_p4)
}
  0x90   : > { %s4731_s7 = sld [smem:[#allocation47_spill]]  ;;  %s3608_s30 = scalar_lea.vmem %s687_s21, 16 }
  0x91   : > { %p3609_p1 = scmp.ne.s32.totalorder %s687_s21, %s3608_s30  ;;  %s3615_s23 = scalar_lea.vmem %s687_s21, 32 }
  0x92   : > { %p3616_p12 = scmp.lt.s32.totalorder %s687_s21, %s687_s21  ;;  %p3617_p0 = scmp.lt.s32.totalorder %s3615_s23, %s3608_s30 }
  0x93   : > { %p3611_p10 = pnand %p3609_p1, %p4062_p7 }
  0x94   : > { %p3618_p13 = por %p3617_p0, %p3616_p12 }
  0x95   : > { %p3612_p11 = pneg %p3611_p10 }
  0x96   : > { %3177 = dma.hbm_to_vmem [thread:$0]  (!%p4052_p6), %s4731_s7, 16, %s662_s24, [#allocation12]  }
  0x97   : > { %p3619_p3 = pnand %p3618_p13, %p3612_p11 }
  0x99   : > { %3622 = shalt.err (!%p3619_p3)
}
  0x9a   : > { %s4732_s11 = sld [smem:[#allocation49_spill]]  ;;  %s3867_s3 = smov [#allocation19]  }
  0x9b   : > { %s714_s24 = sshll.u32 %s3867_s3, 4  ;;  %s3868_s25 = smov [#allocation22]   ;;  %s715_s24 = int_to_ptr.vmem [resolvable:$true] %s714_s24 }
  0x9c   : > { %s738_s9 = sshll.u32 %s3868_s25, 4  ;;  %s3634_s1 = scalar_lea.vmem %s715_s24, 16  ;;  %s739_s9 = int_to_ptr.vmem [resolvable:$true] %s738_s9 }
  0x9d   : > { %p3635_p2 = scmp.ne.s32.totalorder %s715_s24, %s3634_s1  ;;  %s3641_s7 = scalar_lea.vmem %s715_s24, 32 }
  0x9e   : > { %p3642_p3 = scmp.lt.s32.totalorder %s715_s24, %s715_s24  ;;  %p3643_p9 = scmp.lt.s32.totalorder %s3641_s7, %s3634_s1 }
  0x9f   : > { %p3637_p5 = pnand %p3635_p2, %p4062_p7 }
  0xa0   : > { %3183 = dma.hbm_to_vmem [thread:$0]  (!%p4052_p6), %s4732_s11, 16, %s687_s21, [#allocation15]  }
  0xa1   : > { %p3638_p8 = pneg %p3637_p5  ;;  %p3644_p4 = por %p3643_p9, %p3642_p3 }
  0xa3   : > { %p3645_p1 = pnand %p3644_p4, %p3638_p8 }
  0xa5   : > { %3648 = shalt.err (!%p3645_p1)
}
  0xa6   : > { %s4733_s15 = sld [smem:[#allocation51_spill]]  ;;  %s3660_s23 = scalar_lea.vmem %s739_s9, 16 }
  0xa7   : > { %p3661_p10 = scmp.ne.s32.totalorder %s739_s9, %s3660_s23  ;;  %s3667_s2 = scalar_lea.vmem %s739_s9, 32 }
  0xa8   : > { %p3668_p0 = scmp.lt.s32.totalorder %s739_s9, %s739_s9  ;;  %p3669_p13 = scmp.lt.s32.totalorder %s3667_s2, %s3660_s23 }
  0xa9   : > { %p3663_p11 = pnand %p3661_p10, %p4062_p7 }
  0xaa   : > { %p3670_p2 = por %p3669_p13, %p3668_p0 }
  0xab   : > { %p3664_p12 = pneg %p3663_p11 }
  0xac   : > { %3189 = dma.hbm_to_vmem [thread:$0]  (!%p4052_p6), %s4733_s15, 16, %s715_s24, [#allocation18]  }
  0xad   : > { %p3671_p5 = pnand %p3670_p2, %p3664_p12 }
  0xaf   : > { %3674 = shalt.err (!%p3671_p5)
}
  0xb0   : > { %s4734_s17 = sld [smem:[#allocation53_spill]]  ;;  %s3869_s25 = smov [#allocation25]  }
  0xb1   : > { %s764_s24 = sshll.u32 %s3869_s25, 4  ;;  %s765_s24 = int_to_ptr.vmem [resolvable:$true] %s764_s24 }
  0xb2   : > { %s3686_s1 = scalar_lea.vmem %s765_s24, 256  ;;  %p3694_p4 = scmp.lt.s32.totalorder %s765_s24, %s765_s24 }
  0xb3   : > { %p3687_p8 = scmp.ne.s32.totalorder %s765_s24, %s3686_s1  ;;  %p3695_p1 = scmp.lt.s32.totalorder %s3686_s1, %s3686_s1 }
  0xb5   : > { %p3689_p3 = pnand %p3687_p8, %p4062_p7  ;;  %p3696_p10 = por %p3695_p1, %p3694_p4 }
  0xb6   : > { %3195 = dma.hbm_to_vmem [thread:$0]  (!%p4052_p6), %s4734_s17, 16, %s739_s9, [#allocation21]  }
  0xb7   : > { %p3690_p9 = pneg %p3689_p3 }
  0xb9   : > { %p3697_p11 = pnand %p3696_p10, %p3690_p9 }
  0xbb   : > { %3700 = shalt.err (!%p3697_p11)
}
  0xbc   : > { %s4735_s7 = smov 4   ;;  %s4736_s21 = smov 64  }
  0xbd   : > { %s4737_s20 = sld [smem:[#allocation55_spill]]  ;;  %s2785_s8 = sadd.s32 4294967294, %s3853_s28  }
  0xbe   : > { %s4181_s6 = sadd.s32 1, %s3853_s28   ;;  %s108_s23 = sadd.s32 1, %s3849_s27 }
  0xbf   : > { %s105_s2 = ssub.s32 %s3853_s28, %s4181_s6  ;;  %p115_p7 = scmp.ne.s32.totalorder %s3849_s27, %s3845_s26 }
  0xc0   : > { %p106_p12 = scmp.eq.s32.totalorder %s105_s2, 0  ;;  %p116_p0 = scmp.eq.s32.totalorder %s3853_s28, 0 }
  0xc1   : > { %p121_p13 = scmp.ne.s32.totalorder %s3845_s26, %s3841_s5  ;;  %p591_p2 = scmp.eq.s32.totalorder %s4036_s29, 1 }
  0xc2   : > { %s4193_s4 = scalar_select %p106_p12, %s3849_s27, %s108_s23  }
  0xc3   : > { %3201 = dma.hbm_to_vmem [thread:$0]  (!%p4052_p6), %s4737_s20, 256, %s765_s24, [#allocation24], %s4736_s21, %s4736_s21, %s4735_s7  }
  0xc4   : > { %4738 = sst [smem:[#allocation38_spill]] %s4193_s4  ;;  %p117_p5 = por %p116_p0, %p115_p7 }
  0xc5   : > { %p4739_p8 = scmp.eq.s32.totalorder %s4036_s29, 0  ;;  %p4201_p6 = por %p591_p2, %p115_p7 }
  0xc6   : > { %p597_p9 = scmp.eq.s32.totalorder %s2785_s8, 1  ;;  %p3226_p4 = scmp.lt.s32.totalorder %s3853_s28, 2 }
  0xc7   : > { %p4197_p3 = por %p4739_p8, %p121_p13  ;;  %s4207_s24 = sand.u32 1, %s3849_s27  }
  0xc8   : > { %s4741_s25 = scalar_select %p4201_p6, 1, 0 }
  0xc9   : > { %s4740_s3 = scalar_select %p4197_p3, 1, 0 }
  0xca   : > { %p4209_p1 = por %p597_p9, %p121_p13  ;;  %s2801_s7 = sshll.u32 %s3853_s28, 4 }
  0xcb   : > { %s4743_s9 = sld [smem:[#allocation41_spill]]  ;;  %s805_s2 = scalar_lea.vmem [#allocation2], %s4207_s24 }
  0xcc   : > { %s4742_s1 = scalar_select %p4209_p1, 1, 0 }
  0xcd   : > { %s812_s8 = sshll.u32 %s805_s2, 4  ;;  %p4222_p10 = pnand %p3226_p4, %p117_p5  ;;  %s4220_s8 = int_to_ptr.vmem [resolvable:$true] %s812_s8 }
  0xce   : > { %s4745_s17 = sld [smem:[#allocation42_spill]]  ;;  %s803_s30 = scalar_lea.sflag [#allocation3], %s4207_s24 }
  0xcf   : > { %p3703_p7 = pneg %p4222_p10 }
  0xd1   : > { %s4217_s23 = scalar_lea.hbm %s4743_s9, %s2801_s7  ;;  %s3706_s4 = scalar_lea.hbm %s4743_s9, 32 }
  0xd2   : > { %s3701_s18 = scalar_lea.hbm %s4217_s23, 16  ;;  %p3707_p13 = scmp.lt.s32.totalorder %s4217_s23, %s4743_s9 }
  0xd3   : > { %p3702_p11 = scmp.ne.s32.totalorder %s4217_s23, %s3701_s18  ;;  %p3708_p2 = scmp.lt.s32.totalorder %s3706_s4, %s3701_s18 }
  0xd4   : > { %s4230_s21 = scalar_lea.hbm %s4745_s17, %s2801_s7 }
  0xd5   : > { %p3704_p12 = pnand %p3703_p7, %p3702_p11  ;;  %p3709_p5 = por %p3708_p2, %p3707_p13 }
  0xd7   : > { %p3705_p0 = pneg %p3704_p12 }
  0xd9   : > { %p3710_p8 = pnand %p3709_p5, %p3705_p0 }
  0xdb   : > { %3713 = shalt.err (!%p3710_p8)
}
  0xdc   : > { %s3714_s15 = scalar_lea.vmem %s4220_s8, 16  ;;  %s3870_s16 = smov [#allocation2]  }
  0xdd   : > { %p3715_p9 = scmp.ne.s32.totalorder %s4220_s8, %s3714_s15  ;;  %s3719_s20 = sshll.u32 %s3870_s16, 4  ;;  %s3720_s20 = int_to_ptr.vmem [resolvable:$false] %s3719_s20 }
  0xde   : > { %s3721_s7 = scalar_lea.vmem %s3720_s20, 32  ;;  %p3722_p12 = scmp.lt.s32.totalorder %s4220_s8, %s3720_s20 }
  0xdf   : > { %p3717_p4 = pnand %p3715_p9, %p3703_p7  ;;  %p3723_p1 = scmp.lt.s32.totalorder %s3721_s7, %s3714_s15 }
  0xe1   : > { %p3718_p11 = pneg %p3717_p4  ;;  %p3724_p6 = por %p3723_p1, %p3722_p12 }
  0xe3   : > { %p3725_p13 = pnand %p3724_p6, %p3718_p11 }
  0xe5   : > { %3728 = shalt.err (!%p3725_p13)
}
  0xe6   : > { %3205 = dma.hbm_to_vmem [thread:$0]  (!%p4222_p10), %s4217_s23, 16, %s4220_s8, %s803_s30  }
  0xe7   : > { %s822_s13 = scalar_lea.vmem [#allocation5], %s4207_s24  ;;  %s4746_s27 = sand.u32 1, %s3853_s28  }
  0xe8   : > { %s829_s18 = sshll.u32 %s822_s13, 4  ;;  %s820_s4 = scalar_lea.sflag [#allocation6], %s4746_s27  ;;  %s830_s18 = int_to_ptr.vmem [resolvable:$true] %s829_s18 }
  0xe9   : > { %s3729_s2 = scalar_lea.hbm %s4230_s21, 16  ;;  %s3734_s20 = scalar_lea.hbm %s4745_s17, 32 }
  0xea   : > { %p3730_p1 = scmp.ne.s32.totalorder %s4230_s21, %s3729_s2  ;;  %p3735_p2 = scmp.lt.s32.totalorder %s4230_s21, %s4745_s17 }
  0xeb   : > { %p3736_p5 = scmp.lt.s32.totalorder %s3734_s20, %s3729_s2 }
  0xec   : > { %p3732_p6 = pnand %p3730_p1, %p3703_p7 }
  0xed   : > { %p3737_p8 = por %p3736_p5, %p3735_p2 }
  0xee   : > { %p3733_p0 = pneg %p3732_p6 }
  0xf0   : > { %p3738_p9 = pnand %p3737_p8, %p3733_p0 }
  0xf2   : > { %3741 = shalt.err (!%p3738_p9)
}
  0xf3   : > { %s3742_s24 = scalar_lea.vmem %s830_s18, 16  ;;  %s3871_s23 = smov [#allocation5]  }
  0xf4   : > { %p3743_p4 = scmp.ne.s32.totalorder %s830_s18, %s3742_s24  ;;  %s3747_s8 = sshll.u32 %s3871_s23, 4  ;;  %s3748_s8 = int_to_ptr.vmem [resolvable:$false] %s3747_s8 }
  0xf5   : > { %s3749_s30 = scalar_lea.vmem %s3748_s8, 32  ;;  %p3750_p13 = scmp.lt.s32.totalorder %s830_s18, %s3748_s8 }
  0xf6   : > { %p3745_p11 = pnand %p3743_p4, %p3703_p7  ;;  %p3751_p1 = scmp.lt.s32.totalorder %s3749_s30, %s3742_s24 }
  0xf8   : > { %p3746_p12 = pneg %p3745_p11  ;;  %p3752_p6 = por %p3751_p1, %p3750_p13 }
  0xfa   : > { %p3753_p3 = pnand %p3752_p6, %p3746_p12 }
  0xfc   : > { %3756 = shalt.err (!%p3753_p3)
}
  0xfd   : > { %3208 = dma.hbm_to_vmem [thread:$0]  (!%p4222_p10), %s4230_s21, 16, %s830_s18, %s820_s4  }
  0xfe   : > { %p4747_p0 = scmp.ne.s32.totalorder %s4720_s0, 0 }
  0xff   : > { %s4281_s9 = sand.u32 (!%p4747_p0), 1, %s3845_s26   ;;  %p4748_p7 = scmp.ne.s32.totalorder (!%p4747_p0), %s4740_s3, 0 }
 0x100   : > { %838 = sbr.rel (%p4747_p0) target bundleno = 4892 (0x131c), region = 116  ;;  %s841_s13 = scalar_lea.sflag (!%p4747_p0), [#allocation3], %s4281_s9 }
 0x101   : > { %s843_s27 = scalar_lea.vmem (!%p4747_p0), [#allocation2], %s4281_s9 }
 0x105   : > { %3800 = dma.done.wait (%p4748_p7), %s841_s13, 16  }
 0x106   : > { %3802 = vsyncadd (%p4748_p7), %s841_s13, 4294967280  ;;  %s848_s11 = sand.u32 1, %s4036_s29   ;;  %s851_s0 = scalar_lea.vmem [#allocation5], %s4281_s9 }
 0x107   : > { %s849_s21 = scalar_lea.sflag [#allocation6], %s848_s11 }
 0x108   : > { %3804 = dma.done.wait (%p4748_p7), %s849_s21, 16  }
 0x109   : > { %3806 = vsyncadd (%p4748_p7), %s849_s21, 4294967280  ;;  %p4749_p3 = scmp.eq.s32.totalorder %s4036_s29, 0 }
 0x10b   : > { %3808 = dma.done.wait (%p4749_p3), [#allocation6], 16   ;;  %p4750_p10 = pmov %p4749_p3 }
 0x10c   : > { %p4751_p2 = pmov %p4749_p3 }
 0x10d   : > { %3810 = vsyncadd (%p4750_p10), [#allocation6], 4294967280 }
 0x10e   : > { %3812 = dma.done.wait (%p4751_p2), [#allocation9], 32   ;;  %p4752_p5 = pmov %p4751_p2 }
 0x10f   : > { %p4753_p8 = pmov %p4751_p2 }
 0x110   : > { %3814 = vsyncadd (%p4752_p5), [#allocation9], 4294967264 }
 0x111   : > { %3816 = dma.done.wait (%p4753_p8), [#allocation12], 32   ;;  %p4754_p9 = pmov %p4751_p2 }
 0x112   : > { %p4755_p4 = pmov %p4751_p2 }
 0x113   : > { %3818 = vsyncadd (%p4754_p9), [#allocation12], 4294967264 }
 0x114   : > { %3820 = dma.done.wait (%p4755_p4), [#allocation15], 32   ;;  %p4756_p11 = pmov %p4751_p2 }
 0x115   : > { %p4757_p12 = pmov %p4751_p2 }
 0x116   : > { %3822 = vsyncadd (%p4756_p11), [#allocation15], 4294967264 }
 0x117   : > { %3824 = dma.done.wait (%p4757_p12), [#allocation18], 32   ;;  %p4758_p13 = pmov %p4751_p2 }
 0x118   : > { %p4759_p1 = pmov %p4751_p2 }
 0x119   : > { %3826 = vsyncadd (%p4758_p13), [#allocation18], 4294967264 }
 0x11a   : > { %3828 = dma.done.wait (%p4759_p1), [#allocation21], 272   ;;  %p4760_p6 = pmov %p4759_p1 }
 0x11b   : > { %p4761_p0 = pmov %p4759_p1 }
 0x11c   : > { %3830 = vsyncadd (%p4760_p6), [#allocation21], 4294967024 }
 0x11d   : > { %3832 = dma.done.wait (%p4761_p0), [#allocation24], 512   ;;  %p4762_p7 = pmov %p4761_p0 }
 0x11e   : > { %p980_p3 = scmp.lt.s32.totalorder %s4036_s29, 1  ;;  %s4763_s15 = sld [smem:[#allocation39_spill]]  ;;  %vm995_vm0 = vcmask 261120   ;;  %v3305_v7 = vld [vmem:[%s4671_s10 + $0x8] sm:$0xff]   ;;  %v3872_v8 = vmov 0.0   ;;  %vm3873_vm1 = vmmov 0   ;;  %v1094_v33 = vlaneseq }
 0x11f   : > { %3834 = vsyncadd (%p4762_p7), [#allocation24], 4294966784  ;;  %2940 = vmatprep.subr.bf16.mxu1 %v3872_v8  ;;  %2944 = vmatprep.mubr.msk.bf16.mxu1 %vm3873_vm1, %v3872_v8  ;;  %v3306_v9 = vld [vmem:[%s4671_s10] sm:$0xff]   ;;  %v2823_v20 = vld [vmem:[#allocation16] ss:$0 sm:$0xff]  ;;  %s3874_s8 = smov 64  }
 0x120   : > { %s4325_s3 = scalar_select %p980_p3, %s4036_s29, 1  ;;  %2941 = vmatpush3.bf16.msra.mxu1 %v3305_v7  ;;  %2966 = vmatprep.subr.bf16.mxu0 %v3872_v8  ;;  %v2821_v14 = vld [vmem:[#allocation7] ss:$0 sm:$0xff]  ;;  %v2822_v16 = vld [vmem:[#allocation8] ss:$0 sm:$0xff]  ;;  %vm1113_vm2 = vcmask 64512  }
 0x121   : > { %2942 = vmatprep.subr.bf16.mxu1 %v3872_v8  ;;  %2968 = vmatprep.mubr.msk.bf16.mxu0 %vm3873_vm1, %v3872_v8  ;;  %s3875_s30 = smov 96   ;;  %vm1177_vm3 = vcmask 1043456   ;;  %v1091_v34 = vld [vmem:[%s843_s27] sm:$0x1]  ;;  %v4368_v35 = vshrl.u32 %v1094_v33, 7  ;;  %v1097_v36 = vand.u32 127, %v1094_v33 }
 0x122   : > { %s2818_s18 = sshll.u32 %s4325_s3, 3  ;;  %vm1092_vm4 = vcmp.ne.s32.totalorder %v1091_v34, 0  ;;  %v3876_v38 = vmov -1e+30   ;;  %s3877_s13 = smov 80   ;;  %vm1565_vm6 = vcmask 130048  }
 0x123   : > { %v1103_v37 = vsub.s32 0, %v4368_v35  ;;  %v1093_v39 = vsel %vm1092_vm4, 0.0, %v3876_v38  ;;  %vm1098_vm5 = vcmp.le.s32.totalorder %v1097_v36, %v4368_v35  ;;  %s3878_s27 = smov 88   ;;  %s3879_s11 = smov 120   ;;  %vm1567_vm7 = vcmask 195584  }
 0x124   : > { %s983_s16 = scalar_lea.vmem %s4763_s15, %s2818_s18  ;;  %2943 = vmatpush3.bf16.msra.mxu1 %v3306_v9  ;;  %v1099_v41 = vsel %vm1098_vm5, 0.0, %v3876_v38  ;;  %s3880_s21 = smov 112  }
 0x125   : > { %v4331_v0 = vld [vmem:[%s983_s16] sm:$0xff]  ;;  %2948 = vmatprep.subr.bf16.mxu1 %v3872_v8  ;;  %v1104_v40 = vrot.slane %v1093_v39, %v1103_v37  ;;  %s3881_s18 = smov 72   ;;  %s3882_s4 = smov 104  }
 0x126   : > { %v996_v1 = vsel %vm995_vm0, %v4331_v0, 0.0  ;;  %s3883_s2 = smov 48   ;;  %s3884_s15 = smov 56  }
 0x127   : > { %997 = vadd.xlane.f32.xlu0 %v996_v1  ;;  %v4376_v42 = vadd.f32 %v1104_v40, %v1099_v41  ;;  %s3885_s16 = smov 40   ;;  %s3886_s24 = smov 8  }
 0x128   : > { %s4764_s23 = sld [smem:[#allocation40_spill]]  ;;  %p4770_p2 = scmp.ne.s32.totalorder %s4741_s25, 0 }
 0x1b0   : > { %v998_v2 = vpop.xlane.xlu0 %997 }
 0x1b1   : > { %v1000_v3 = vmul.f32 0.03125, %v998_v2 }
 0x1b3   : > { %v1001_v4 = vsub.f32 %v4331_v0, %v1000_v3 }
 0x1b5   : > { %v1002_v5 = vmul.f32 %v1001_v4, %v1001_v4 }
 0x1b7   : > { %v1003_v6 = vsel %vm995_vm0, %v1002_v5, 0.0 }
 0x1b8   : > { %1004 = vadd.xlane.f32.xlu0 %v1003_v6 }
 0x241   : > { %v1005_v10 = vpop.xlane.xlu0 %1004 }
 0x242   : > { %v1006_v11 = vmul.f32 0.03125, %v1005_v10 }
 0x244   : > { %v1007_v12 = vadd.f32 1e-05, %v1006_v11 }
 0x246   : > { %3325 = vrsqrt.f32 %v1007_v12 }
 0x253   : > { %v3326_v13 = vpop.eup %3325 }
 0x254   : > { %v1009_v15 = vmul.f32 %v3326_v13, %v1001_v4 }
 0x256   : > { %v1016_v17 = vmul.f32 %v2821_v14, %v1009_v15 }
 0x258   : > { %v1023_v18 = vadd.f32 %v2822_v16, %v1016_v17 }
 0x25a   : > { %v1024_v19 = vpack.c.bf16 %v1023_v18, %v1023_v18 }
 0x25c   : > { %2945 = vmatmul.mubr.msk.bf16.vlgmr.msra.gmra.mxu1 %vm995_vm0, %v1024_v19 }
 0x25d   : > { %2950 = vmatprep.mubr.msk.bf16.mxu1 %vm3873_vm1, %v3872_v8 }
 0x31c   : > { %v1085_v21 = vpop.f32.mrf.mxu1 }
 0x31d   : > { %v1086_v22 = vadd.f32 %v2823_v20, %v1085_v21 }
 0x31e   : > { %v2946_v23 = vpop.f32.mrf.mxu1 }
 0x31f   : > { %v4354_v24 = vpack.c.bf16 %v1086_v22, %v1086_v22  ;;  %v1107_v29 = vmul.f32 0.35355338, %v1086_v22 }
 0x320   : > { %v1088_v25 = vpop.f32.mrf.mxu1 }
 0x321   : > { %1172 = vrot.lane.b32.xlu0 %v4354_v24, %s3874_s8  ;;  %1111 = vrot.lane.b32.xlu1 %v4354_v24, %s3875_s30  ;;  %v1108_v31 = vpack.c.bf16 %v1107_v29, %v1107_v29 }
 0x322   : > { %v2947_v26 = vpop.f32.mrf.mxu1 }
 0x393   : > { %v1112_v27 = vpop.permute.xlu1 %1111  ;;  %v1173_v30 = vpop.permute.xlu0 %1172 }
 0x394   : > { %v1118_v28 = vsel %vm1113_vm2, %v1112_v27, 0  ;;  %v1179_v32 = vsel %vm1177_vm3, %v1173_v30, 0 }
 0x395   : > { %2949 = vmatpush3.bf16.xpose.msra.mxu1 %v1118_v28 }
 0x396   : > { %2954 = vmatprep.subr.bf16.mxu1 %v3872_v8 }
 0x39c   : > { %2951 = vmatmul.mubr.msk.bf16.vlgmr.msra.gmra.mxu1 %vm1113_vm2, %v1108_v31 }
 0x39d   : > { %2955 = vmatpush3.bf16.msra.mxu1 %v1179_v32  ;;  %2956 = vmatprep.mubr.msk.bf16.mxu1 %vm3873_vm1, %v3872_v8 }
 0x39e   : > { %2960 = vmatprep.subr.bf16.mxu1 %v3872_v8 }
 0x45c   : > { %v1154_v43 = vpop.f32.mrf.mxu1 }
 0x45d   : > { %v1155_v44 = vadd.f32 %v1154_v43, %v4376_v42 }
 0x45e   : > { %v2952_v45 = vpop.f32.mrf.mxu1 }
 0x45f   : > { %v1160_v46 = vsel %vm1113_vm2, %v1155_v44, -inf }
 0x460   : > { %1161 = vmax.xlane.f32.xlu1 %v1160_v46  ;;  %v1157_v47 = vpop.f32.mrf.mxu1 }
 0x462   : > { %v2953_v48 = vpop.f32.mrf.mxu1 }
 0x471   : > { %1334 = vrot.lane.b32.xlu1 %v4354_v24, %s3877_s13 }
 0x4e9   : > { %v1162_v49 = vpop.xlane.xlu1 %1161 }
 0x4ea   : > { %v1163_v50 = vsub.f32 %v1155_v44, %v1162_v49 }
 0x4ec   : > { %v1164_v51 = vmul.f32 1.442695, %v1163_v50 }
 0x4ed   : > { %v1335_v61 = vpop.permute.xlu1 %1334 }
 0x4ee   : > { %3327 = vpow2.f32 %v1164_v51  ;;  %v1340_v63 = vsel %vm1113_vm2, %v1335_v61, 0 }
 0x4fb   : > { %v3328_v52 = vpop.eup %3327 }
 0x4fc   : > { %v1166_v53 = vsel %vm1113_vm2, %v3328_v52, 0.0 }
 0x4fd   : > { %1167 = vadd.xlane.f32.xlu0 %v1166_v53 }
 0x513   : > { %1224 = vrot.lane.b32.xlu0 %v4354_v24, %s3878_s27 }
 0x517   : > { %1222 = vrot.lane.b32.xlu0 %v1108_v31, %s3879_s11 }
 0x51b   : > { %1332 = vrot.lane.b32.xlu0 %v1108_v31, %s3880_s21 }
 0x51f   : > { %1444 = vrot.lane.b32.xlu0 %v4354_v24, %s3881_s18 }
 0x523   : > { %1442 = vrot.lane.b32.xlu0 %v1108_v31, %s3882_s4 }
 0x586   : > { %v1168_v54 = vpop.xlane.xlu0 %1167 }
 0x587   : > { %3329 = vrcp.f32 %v1168_v54 }
 0x58a   : > { %v1225_v56 = vpop.permute.xlu0 %1224 }
 0x58b   : > { %v1230_v59 = vsel %vm1113_vm2, %v1225_v56, 0 }
 0x58e   : > { %v1223_v60 = vpop.permute.xlu0 %1222 }
 0x592   : > { %v1333_v62 = vpop.permute.xlu0 %1332 }
 0x594   : > { %v3330_v55 = vpop.eup %3329 }
 0x595   : > { %v1170_v57 = vmul.f32 %v3330_v55, %v3328_v52 }
 0x596   : > { %v1445_v1 = vpop.permute.xlu0 %1444 }
 0x597   : > { %v1171_v58 = vpack.c.bf16 %v1170_v57, %v1170_v57  ;;  %v1450_v2 = vsel %vm1113_vm2, %v1445_v1, 0 }
 0x599   : > { %2957 = vmatmul.mubr.msk.bf16.vlgmr.msra.gmra.mxu1 %vm1113_vm2, %v1171_v58 }
 0x59a   : > { %2961 = vmatpush3.bf16.xpose.msra.mxu1 %v1230_v59  ;;  %2962 = vmatprep.mubr.msk.bf16.mxu1 %vm3873_vm1, %v3872_v8  ;;  %v1443_v3 = vpop.permute.xlu0 %1442 }
 0x59b   : > { %2972 = vmatprep.subr.bf16.mxu1 %v3872_v8 }
 0x5a1   : > { %2963 = vmatmul.mubr.msk.bf16.vlgmr.msra.gmra.mxu1 %vm1113_vm2, %v1223_v60 }
 0x5a2   : > { %2973 = vmatpush3.bf16.xpose.msra.mxu1 %v1340_v63  ;;  %2974 = vmatprep.mubr.msk.bf16.mxu1 %vm3873_vm1, %v3872_v8  ;;  %v3307_v63 = vld [vmem:[%s4673_s12 + $0x8] sm:$0xff]  }
 0x5a3   : > { %2984 = vmatprep.subr.bf16.mxu1 %v3872_v8 }
 0x5a9   : > { %2975 = vmatmul.mubr.msk.bf16.vlgmr.msra.gmra.mxu1 %vm1113_vm2, %v1333_v62 }
 0x5aa   : > { %2985 = vmatpush3.bf16.xpose.msra.mxu1 %v1450_v2  ;;  %2986 = vmatprep.mubr.msk.bf16.mxu1 %vm3873_vm1, %v3872_v8 }
 0x5ab   : > { %2996 = vmatprep.subr.bf16.mxu1 %v3872_v8 }
 0x5b1   : > { %2987 = vmatmul.mubr.msk.bf16.vlgmr.msra.gmra.mxu1 %vm1113_vm2, %v1443_v3  ;;  %v3308_v3 = vld [vmem:[%s4673_s12] sm:$0xff]  }
 0x5b2   : > { %3000 = vmatprep.mubr.msk.bf16.mxu1 %vm3873_vm1, %v3872_v8  ;;  %2997 = vmatpush3.bf16.msra.mxu1 %v3307_v63  ;;  %v2841_v63 = vld [vmem:[#allocation19] ss:$0 sm:$0xff] }
 0x5b3   : > { %2998 = vmatprep.subr.bf16.mxu1 %v3872_v8 }
 0x5b6   : > { %2999 = vmatpush3.bf16.msra.mxu1 %v3308_v3 }
 0x5b7   : > { %3012 = vmatprep.subr.bf16.mxu1 %v3872_v8 }
 0x659   : > { %v4408_v4 = vpop.f32.mrf.mxu1 }
 0x65b   : > { %v2958_v5 = vpop.f32.mrf.mxu1 }
 0x65d   : > { %v1218_v6 = vpop.f32.mrf.mxu1 }
 0x65f   : > { %v2959_v7 = vpop.f32.mrf.mxu1 }
 0x661   : > { %v1266_v9 = vpop.f32.mrf.mxu1 }
 0x662   : > { %v1267_v10 = vadd.f32 %v1266_v9, %v4376_v42 }
 0x663   : > { %v2964_v11 = vpop.f32.mrf.mxu1 }
 0x664   : > { %v1272_v12 = vsel %vm1113_vm2, %v1267_v10, -inf }
 0x665   : > { %1273 = vmax.xlane.f32.xlu0 %v1272_v12  ;;  %v1269_v13 = vpop.f32.mrf.mxu1 }
 0x667   : > { %v2965_v14 = vpop.f32.mrf.mxu1 }
 0x669   : > { %v1376_v15 = vpop.f32.mrf.mxu1 }
 0x66a   : > { %v1377_v16 = vadd.f32 %v1376_v15, %v4376_v42 }
 0x66b   : > { %v2976_v17 = vpop.f32.mrf.mxu1 }
 0x66c   : > { %v1382_v18 = vsel %vm1113_vm2, %v1377_v16, -inf }
 0x66d   : > { %1383 = vmax.xlane.f32.xlu1 %v1382_v18  ;;  %v1379_v19 = vpop.f32.mrf.mxu1 }
 0x66f   : > { %v2977_v20 = vpop.f32.mrf.mxu1 }
 0x671   : > { %v1486_v21 = vpop.f32.mrf.mxu1 }
 0x672   : > { %v1487_v22 = vadd.f32 %v1486_v21, %v4376_v42 }
 0x673   : > { %v2988_v23 = vpop.f32.mrf.mxu1 }
 0x674   : > { %v1492_v25 = vsel %vm1113_vm2, %v1487_v22, -inf  ;;  %v2835_v23 = vld [vmem:[#allocation17] ss:$0 sm:$0xff] }
 0x675   : > { %1493 = vmax.xlane.f32.xlu0 %v1492_v25  ;;  %v1489_v26 = vpop.f32.mrf.mxu1 }
 0x677   : > { %v2989_v27 = vpop.f32.mrf.mxu1 }
 0x67e   : > { %1394 = vrot.lane.b32.xlu1 %v4354_v24, %s3883_s2  ;;  %s4698_s2 = smov 16  }
 0x6ee   : > { %v1274_v28 = vpop.xlane.xlu0 %1273 }
 0x6ef   : > { %v1275_v29 = vsub.f32 %v1267_v10, %v1274_v28 }
 0x6f1   : > { %v1276_v30 = vmul.f32 1.442695, %v1275_v29 }
 0x6f3   : > { %3331 = vpow2.f32 %v1276_v30 }
 0x6f6   : > { %v1384_v31 = vpop.xlane.xlu1 %1383 }
 0x6f7   : > { %v1385_v32 = vsub.f32 %v1377_v16, %v1384_v31  ;;  %v3309_v31 = vld [vmem:[#allocation20 + $0x8] sm:$0xff]  }
 0x6f9   : > { %v1386_v33 = vmul.f32 1.442695, %v1385_v32 }
 0x6fa   : > { %v1395_v48 = vpop.permute.xlu1 %1394 }
 0x6fb   : > { %3333 = vpow2.f32 %v1386_v33  ;;  %v1400_v55 = vsel %vm1177_vm3, %v1395_v48, 0 }
 0x6fe   : > { %v1494_v34 = vpop.xlane.xlu0 %1493 }
 0x6ff   : > { %v1495_v36 = vsub.f32 %v1487_v22, %v1494_v34 }
 0x700   : > { %v3332_v39 = vpop.eup %3331 }
 0x701   : > { %v1496_v40 = vmul.f32 1.442695, %v1495_v36  ;;  %v1278_v41 = vsel %vm1113_vm2, %v3332_v39, 0.0 }
 0x702   : > { %1279 = vadd.xlane.f32.xlu0 %v1278_v41  ;;  %v3310_v41 = vld [vmem:[#allocation20] sm:$0xff]  }
 0x703   : > { %3335 = vpow2.f32 %v1496_v40 }
 0x708   : > { %v3334_v42 = vpop.eup %3333 }
 0x709   : > { %v1388_v43 = vsel %vm1113_vm2, %v3334_v42, 0.0 }
 0x70a   : > { %1389 = vadd.xlane.f32.xlu0 %v1388_v43  ;;  %v3311_v43 = vld [vmem:[%s4675_s14 + $0x8] sm:$0xff]  }
 0x710   : > { %v3336_v44 = vpop.eup %3335 }
 0x711   : > { %v1498_v45 = vsel %vm1113_vm2, %v3336_v44, 0.0 }
 0x712   : > { %1499 = vadd.xlane.f32.xlu1 %v1498_v45 }
 0x720   : > { %1284 = vrot.lane.b32.xlu0 %v4354_v24, %s3884_s15  ;;  %s4697_s15 = smov 24  }
 0x723   : > { %1504 = vrot.lane.b32.xlu1 %v4354_v24, %s3885_s16  ;;  %s2880_s16 = sshll.u32 %s4325_s3, 4  ;;  %s4769_s3 = sld [smem:[#allocation58_spill]] }
 0x724   : > { %s988_s8 = scalar_lea.vmem %s4764_s23, %s2880_s16 }
 0x725   : > { %v992_v40 = vld [vmem:[%s988_s8 + $0x8] sm:$0xff] }
 0x78b   : > { %v1280_v46 = vpop.xlane.xlu0 %1279 }
 0x78c   : > { %3337 = vrcp.f32 %v1280_v46 }
 0x793   : > { %v1390_v47 = vpop.xlane.xlu0 %1389 }
 0x794   : > { %3339 = vrcp.f32 %v1390_v47 }
 0x797   : > { %v1285_v49 = vpop.permute.xlu0 %1284 }
 0x798   : > { %v1290_v50 = vsel %vm1177_vm3, %v1285_v49, 0  ;;  %v2839_v49 = vld [vmem:[#allocation10] ss:$0 sm:$0xff] }
 0x799   : > { %v3338_v51 = vpop.eup %3337  ;;  %2967 = vmatpush3.bf16.msra.mxu0 %v1290_v50 }
 0x79a   : > { %2978 = vmatprep.subr.bf16.mxu0 %v3872_v8  ;;  %v1282_v52 = vmul.f32 %v3338_v51, %v3332_v39  ;;  %v2840_v51 = vld [vmem:[#allocation11] ss:$0 sm:$0xff] }
 0x79b   : > { %v1500_v53 = vpop.xlane.xlu1 %1499 }
 0x79c   : > { %3341 = vrcp.f32 %v1500_v53  ;;  %v1283_v54 = vpack.c.bf16 %v1282_v52, %v1282_v52 }
 0x79e   : > { %2969 = vmatmul.mubr.msk.bf16.vlgmr.msra.gmra.mxu0 %vm1113_vm2, %v1283_v54 }
 0x79f   : > { %2979 = vmatpush3.bf16.msra.mxu0 %v1400_v55  ;;  %2980 = vmatprep.mubr.msk.bf16.mxu0 %vm3873_vm1, %v3872_v8  ;;  %v1505_v57 = vpop.permute.xlu1 %1504  ;;  %v2845_v55 = vld [vmem:[#allocation22] ss:$0 sm:$0xff] }
 0x7a0   : > { %2990 = vmatprep.subr.bf16.mxu0 %v3872_v8  ;;  %v1510_v59 = vsel %vm1177_vm3, %v1505_v57, 0 }
 0x7a1   : > { %v3340_v24 = vpop.eup %3339 }
 0x7a2   : > { %v1392_v56 = vmul.f32 %v3340_v24, %v3334_v42 }
 0x7a4   : > { %v1393_v58 = vpack.c.bf16 %v1392_v56, %v1392_v56 }
 0x7a6   : > { %2981 = vmatmul.mubr.msk.bf16.vlgmr.msra.gmra.mxu0 %vm1113_vm2, %v1393_v58 }
 0x7a7   : > { %2991 = vmatpush3.bf16.msra.mxu0 %v1510_v59  ;;  %2992 = vmatprep.mubr.msk.bf16.mxu0 %vm3873_vm1, %v3872_v8 }
 0x7a8   : > { %3004 = vmatprep.subr.bf16.mxu0 %v3872_v8 }
 0x7a9   : > { %v3342_v60 = vpop.eup %3341 }
 0x7aa   : > { %v1502_v61 = vmul.f32 %v3342_v60, %v3336_v44  ;;  %v3312_v44 = vld [vmem:[%s4675_s14] sm:$0xff]  }
 0x7ac   : > { %v1503_v62 = vpack.c.bf16 %v1502_v61, %v1502_v61 }
 0x7ae   : > { %2993 = vmatmul.mubr.msk.bf16.vlgmr.msra.gmra.mxu0 %vm1113_vm2, %v1503_v62 }
 0x7af   : > { %3008 = vmatprep.mubr.msk.bf16.mxu0 %vm3873_vm1, %v3872_v8  ;;  %3005 = vmatpush3.bf16.msra.mxu0 %v3311_v43 }
 0x7b0   : > { %3006 = vmatprep.subr.bf16.mxu0 %v3872_v8 }
 0x7b3   : > { %3007 = vmatpush3.bf16.msra.mxu0 %v3312_v44 }
 0x7b4   : > { %3020 = vmatprep.subr.bf16.mxu0 %v3872_v8 }
 0x85e   : > { %v1326_v1 = vpop.f32.mrf.mxu0 }
 0x85f   : > { %1553 = vrot.lane.b32.xlu1 %v1326_v1, %s3886_s24 }
 0x860   : > { %v2970_v2 = vpop.f32.mrf.mxu0 }
 0x862   : > { %v1329_v5 = vpop.f32.mrf.mxu0 }
 0x864   : > { %v2971_v6 = vpop.f32.mrf.mxu0 }
 0x866   : > { %v1436_v7 = vpop.f32.mrf.mxu0 }
 0x867   : > { %1557 = vrot.lane.b32.xlu0 %v1436_v7, %s4698_s2  ;;  %s4768_s2 = sld [smem:[#allocation57_spill]] }
 0x868   : > { %v2982_v9 = vpop.f32.mrf.mxu0 }
 0x86a   : > { %v1439_v10 = vpop.f32.mrf.mxu0 }
 0x86c   : > { %v2983_v11 = vpop.f32.mrf.mxu0 }
 0x86e   : > { %v1546_v12 = vpop.f32.mrf.mxu0 }
 0x86f   : > { %1561 = vrot.lane.b32.xlu1 %v1546_v12, %s4697_s15  ;;  %s2877_s15 = sshll.u32 %s4036_s29, 7  ;;  %s2538_s29 = scalar_lea.sflag [#allocation4], %s4281_s9 }
 0x870   : > { %v2994_v13 = vpop.f32.mrf.mxu0  ;;  %s4617_s20 = scalar_lea.hbm %s4769_s3, %s2877_s15 }
 0x872   : > { %v1549_v14 = vpop.f32.mrf.mxu0 }
 0x874   : > { %v2995_v15 = vpop.f32.mrf.mxu0 }
 0x8d1   : > { %v1554_v16 = vpop.permute.xlu1 %1553 }
 0x8d2   : > { %v1564_v18 = vsel %vm1113_vm2, %v4408_v4, %v1554_v16 }
 0x8d9   : > { %v1558_v17 = vpop.permute.xlu0 %1557 }
 0x8da   : > { %v1566_v19 = vsel %vm1565_vm6, %v1564_v18, %v1558_v17 }
 0x8e1   : > { %v1562_v20 = vpop.permute.xlu1 %1561 }
 0x8e2   : > { %v1568_v21 = vsel %vm1567_vm7, %v1566_v19, %v1562_v20  ;;  %v1801_v19 = vld [vmem:[%s851_s0] sm:$0x1]  ;;  %s4765_s0 = smov 16  }
 0x8e3   : > { %v1569_v22 = vpack.c.bf16 %v1568_v21, %v1568_v21  ;;  %vm1802_vm8 = vcmp.ne.s32.totalorder %v1801_v19, 0 }
 0x8e4   : > { %v1803_v20 = vsel %vm1802_vm8, 0.0, %v3876_v38 }
 0x8e5   : > { %3001 = vmatmul.mubr.msk.bf16.vlgmr.msra.gmra.mxu1 %vm995_vm0, %v1569_v22  ;;  %v1811_v21 = vrot.slane %v1803_v20, %v1103_v37 }
 0x8e6   : > { %3016 = vmatprep.mubr.msk.bf16.mxu1 %vm3873_vm1, %v3872_v8  ;;  %3013 = vmatpush3.bf16.msra.mxu1 %v3309_v31 }
 0x8e7   : > { %3014 = vmatprep.subr.bf16.mxu1 %v3872_v8 }
 0x8ea   : > { %3015 = vmatpush3.bf16.msra.mxu1 %v3310_v41 }
 0x8eb   : > { %3026 = vmatprep.subr.bf16.mxu1 %v3872_v8 }
 0x9a5   : > { %v1630_v25 = vpop.f32.mrf.mxu1 }
 0x9a6   : > { %v1631_v26 = vadd.f32 %v2835_v23, %v1630_v25 }
 0x9a7   : > { %v3002_v27 = vpop.f32.mrf.mxu1 }
 0x9a8   : > { %v4456_v28 = vadd.f32 %v1631_v26, %v4331_v0  ;;  %v991_v0 = vld [vmem:[%s988_s8] sm:$0xff] }
 0x9a9   : > { %v1633_v4 = vpop.f32.mrf.mxu1  ;;  %v1733_v42 = vpack.c.bf16 %v992_v40, %v991_v0 }
 0x9aa   : > { %v1639_v29 = vsel %vm995_vm0, %v4456_v28, 0.0 }
 0x9ab   : > { %1640 = vadd.xlane.f32.xlu0 %v1639_v29  ;;  %v3003_v30 = vpop.f32.mrf.mxu1  ;;  %3017 = vmatmul.mubr.msk.bf16.vlgmr.msra.gmra.mxu1 %vm995_vm0, %v1733_v42 }
 0x9ac   : > { %3028 = vmatprep.mubr.msk.bf16.mxu1 %vm3873_vm1, %v3872_v8 }
 0xa34   : > { %v1641_v32 = vpop.xlane.xlu0 %1640 }
 0xa35   : > { %v1642_v33 = vmul.f32 0.03125, %v1641_v32 }
 0xa37   : > { %v1643_v34 = vsub.f32 %v4456_v28, %v1642_v33 }
 0xa39   : > { %v1644_v36 = vmul.f32 %v1643_v34, %v1643_v34 }
 0xa3b   : > { %v1645_v39 = vsel %vm995_vm0, %v1644_v36, 0.0 }
 0xa3c   : > { %1646 = vadd.xlane.f32.xlu1 %v1645_v39 }
 0xa6b   : > { %v1794_v24 = vpop.f32.mrf.mxu1 }
 0xa6c   : > { %v1795_v57 = vadd.f32 %v2845_v55, %v1794_v24 }
 0xa6d   : > { %v3018_v56 = vpop.f32.mrf.mxu1 }
 0xa6f   : > { %v1797_v58 = vpop.f32.mrf.mxu1 }
 0xa70   : > { %v1798_v59 = vadd.f32 %v2845_v55, %v1797_v58 }
 0xa71   : > { %v3019_v60 = vpop.f32.mrf.mxu1 }
 0xa72   : > { %v4482_v61 = vpack.c.bf16 %v1798_v59, %v1795_v57 }
 0xa74   : > { %1921 = vrot.lane.b32.xlu0 %v4482_v61, %s3879_s11  ;;  %v1817_v62 = vsel %vm1113_vm2, %v4482_v61, 0 }
 0xa78   : > { %2029 = vrot.lane.b32.xlu0 %v4482_v61, %s3880_s21 }
 0xa7c   : > { %2137 = vrot.lane.b32.xlu0 %v4482_v61, %s3882_s4 }
 0xac5   : > { %v1647_v45 = vpop.xlane.xlu1 %1646 }
 0xac6   : > { %v1648_v46 = vmul.f32 0.03125, %v1647_v45 }
 0xac8   : > { %v1649_v47 = vadd.f32 1e-05, %v1648_v46 }
 0xaca   : > { %3343 = vrsqrt.f32 %v1649_v47 }
 0xad7   : > { %v3344_v48 = vpop.eup %3343 }
 0xad8   : > { %v1651_v50 = vmul.f32 %v3344_v48, %v1643_v34 }
 0xada   : > { %v1658_v52 = vmul.f32 %v2839_v49, %v1651_v50 }
 0xadc   : > { %v1665_v53 = vadd.f32 %v2840_v51, %v1658_v52 }
 0xade   : > { %v1666_v54 = vpack.c.bf16 %v1665_v53, %v1665_v53 }
 0xae0   : > { %3009 = vmatmul.mubr.msk.bf16.vlgmr.msra.gmra.mxu0 %vm995_vm0, %v1666_v54 }
 0xae1   : > { %3022 = vmatprep.mubr.msk.bf16.mxu0 %vm3873_vm1, %v3872_v8  ;;  %3021 = vmatpush3.bf16.xpose.msra.mxu0 %v1817_v62 }
 0xae2   : > { %3032 = vmatprep.subr.bf16.mxu0 %v3872_v8 }
 0xae6   : > { %v1922_v7 = vpop.permute.xlu0 %1921 }
 0xae7   : > { %v1927_v10 = vsel %vm1113_vm2, %v1922_v7, 0 }
 0xaea   : > { %v2030_v12 = vpop.permute.xlu0 %2029 }
 0xaeb   : > { %v2035_v14 = vsel %vm1113_vm2, %v2030_v12, 0 }
 0xaee   : > { %v2138_v15 = vpop.permute.xlu0 %2137 }
 0xaef   : > { %v2143_v17 = vsel %vm1113_vm2, %v2138_v15, 0 }
 0xba0   : > { %v1727_v1 = vpop.f32.mrf.mxu0 }
 0xba1   : > { %v1728_v2 = vadd.f32 %v2841_v63, %v1727_v1 }
 0xba2   : > { %v3010_v3 = vpop.f32.mrf.mxu0 }
 0xba3   : > { %v1804_v5 = vmul.f32 0.35355338, %v1728_v2 }
 0xba4   : > { %v1730_v6 = vpop.f32.mrf.mxu0 }
 0xba5   : > { %v1805_v9 = vpack.c.bf16 %v1804_v5, %v1804_v5 }
 0xba6   : > { %v3011_v11 = vpop.f32.mrf.mxu0 }
 0xba7   : > { %1919 = vrot.lane.b32.xlu1 %v1805_v9, %s3879_s11  ;;  %3023 = vmatmul.mubr.msk.bf16.vlgmr.msra.gmra.mxu0 %vm1113_vm2, %v1805_v9 }
 0xba8   : > { %3033 = vmatpush3.bf16.xpose.msra.mxu0 %v1927_v10  ;;  %3034 = vmatprep.mubr.msk.bf16.mxu0 %vm3873_vm1, %v3872_v8 }
 0xba9   : > { %3044 = vmatprep.subr.bf16.mxu0 %v3872_v8 }
 0xbab   : > { %2027 = vrot.lane.b32.xlu1 %v1805_v9, %s3880_s21  ;;  %s4767_s21 = sld [smem:[#allocation56_spill]] }
 0xbaf   : > { %2135 = vrot.lane.b32.xlu1 %v1805_v9, %s3882_s4 }
 0xc19   : > { %v1920_v13 = vpop.permute.xlu1 %1919 }
 0xc1a   : > { %3035 = vmatmul.mubr.msk.bf16.vlgmr.msra.gmra.mxu0 %vm1113_vm2, %v1920_v13 }
 0xc1b   : > { %3045 = vmatpush3.bf16.xpose.msra.mxu0 %v2035_v14  ;;  %3046 = vmatprep.mubr.msk.bf16.mxu0 %vm3873_vm1, %v3872_v8 }
 0xc1c   : > { %3056 = vmatprep.subr.bf16.mxu0 %v3872_v8 }
 0xc1d   : > { %v2028_v16 = vpop.permute.xlu1 %2027 }
 0xc21   : > { %v2136_v18 = vpop.permute.xlu1 %2135 }
 0xc22   : > { %3047 = vmatmul.mubr.msk.bf16.vlgmr.msra.gmra.mxu0 %vm1113_vm2, %v2028_v16 }
 0xc23   : > { %3057 = vmatpush3.bf16.xpose.msra.mxu0 %v2143_v17  ;;  %3058 = vmatprep.mubr.msk.bf16.mxu0 %vm3873_vm1, %v3872_v8 }
 0xc24   : > { %3068 = vmatprep.subr.bf16.mxu0 %v3872_v8 }
 0xc2a   : > { %3059 = vmatmul.mubr.msk.bf16.vlgmr.msra.gmra.mxu0 %vm1113_vm2, %v2136_v18 }
 0xc2b   : > { %3072 = vmatprep.mubr.msk.bf16.mxu0 %vm3873_vm1, %v3872_v8 }
 0xc67   : > { %v1853_v22 = vpop.f32.mrf.mxu0 }
 0xc68   : > { %v1854_v23 = vadd.f32 %v1853_v22, %v1811_v21 }
 0xc69   : > { %v3024_v25 = vpop.f32.mrf.mxu0 }
 0xc6a   : > { %v1859_v26 = vsel %vm1565_vm6, %v1854_v23, -inf }
 0xc6b   : > { %1860 = vmax.xlane.f32.xlu0 %v1859_v26  ;;  %v1856_v27 = vpop.f32.mrf.mxu0 }
 0xc6d   : > { %v3025_v4 = vpop.f32.mrf.mxu0 }
 0xc6e   : > { %v3313_v4 = vld [vmem:[#allocation23 + $0x8] sm:$0xff]  }
 0xc6f   : > { %3069 = vmatpush3.bf16.msra.mxu0 %v3313_v4 }
 0xc70   : > { %3070 = vmatprep.subr.bf16.mxu0 %v3872_v8 }
 0xcda   : > { %v1963_v29 = vpop.f32.mrf.mxu0 }
 0xcdb   : > { %v1964_v30 = vadd.f32 %v1963_v29, %v1811_v21 }
 0xcdc   : > { %v3036_v31 = vpop.f32.mrf.mxu0 }
 0xcdd   : > { %v1969_v32 = vsel %vm1565_vm6, %v1964_v30, -inf }
 0xcde   : > { %1970 = vmax.xlane.f32.xlu1 %v1969_v32  ;;  %v1966_v33 = vpop.f32.mrf.mxu0 }
 0xce0   : > { %v3037_v34 = vpop.f32.mrf.mxu0 }
 0xce2   : > { %v2071_v38 = vpop.f32.mrf.mxu0 }
 0xce3   : > { %v2072_v36 = vadd.f32 %v2071_v38, %v1811_v21 }
 0xce4   : > { %v3048_v35 = vpop.f32.mrf.mxu0 }
 0xce5   : > { %v2077_v37 = vsel %vm1565_vm6, %v2072_v36, -inf }
 0xce6   : > { %2078 = vmax.xlane.f32.xlu0 %v2077_v37  ;;  %v2074_v39 = vpop.f32.mrf.mxu0  ;;  %v3314_v37 = vld [vmem:[#allocation23] sm:$0xff]  }
 0xce7   : > { %3071 = vmatpush3.bf16.msra.mxu0 %v3314_v37 }
 0xce8   : > { %v3049_v0 = vpop.f32.mrf.mxu0  ;;  %3084 = vmatprep.subr.bf16.mxu0 %v3872_v8 }
 0xcea   : > { %v2179_v40 = vpop.f32.mrf.mxu0 }
 0xceb   : > { %v2180_v41 = vadd.f32 %v2179_v40, %v1811_v21 }
 0xcec   : > { %v3060_v42 = vpop.f32.mrf.mxu0 }
 0xced   : > { %v2185_v43 = vsel %vm1565_vm6, %v2180_v41, -inf }
 0xcee   : > { %2186 = vmax.xlane.f32.xlu0 %v2185_v43  ;;  %v2182_v44 = vpop.f32.mrf.mxu0 }
 0xcf0   : > { %v3061_v45 = vpop.f32.mrf.mxu0 }
 0xcf4   : > { %v1861_v46 = vpop.xlane.xlu0 %1860 }
 0xcf5   : > { %v1862_v47 = vsub.f32 %v1854_v23, %v1861_v46 }
 0xcf7   : > { %v1863_v48 = vmul.f32 1.442695, %v1862_v47 }
 0xcf9   : > { %3345 = vpow2.f32 %v1863_v48 }
 0xd06   : > { %v3346_v49 = vpop.eup %3345 }
 0xd07   : > { %v1865_v50 = vsel %vm1565_vm6, %v3346_v49, 0.0 }
 0xd08   : > { %1866 = vadd.xlane.f32.xlu0 %v1865_v50 }
 0xd67   : > { %v1971_v51 = vpop.xlane.xlu1 %1970 }
 0xd68   : > { %v1972_v52 = vsub.f32 %v1964_v30, %v1971_v51 }
 0xd6a   : > { %v1973_v53 = vmul.f32 1.442695, %v1972_v52 }
 0xd6c   : > { %3347 = vpow2.f32 %v1973_v53 }
 0xd6f   : > { %v2079_v54 = vpop.xlane.xlu0 %2078 }
 0xd70   : > { %v2080_v55 = vsub.f32 %v2072_v36, %v2079_v54 }
 0xd72   : > { %v2081_v24 = vmul.f32 1.442695, %v2080_v55 }
 0xd74   : > { %3349 = vpow2.f32 %v2081_v24 }
 0xd77   : > { %v2187_v60 = vpop.xlane.xlu0 %2186 }
 0xd78   : > { %v2188_v62 = vsub.f32 %v2180_v41, %v2187_v60 }
 0xd79   : > { %v3348_v56 = vpop.eup %3347 }
 0xd7a   : > { %v1975_v57 = vsel %vm1565_vm6, %v3348_v56, 0.0  ;;  %v2189_v63 = vmul.f32 1.442695, %v2188_v62  ;;  %v3315_v62 = vld [vmem:[#allocation25 + $0x8] sm:$0xff]  }
 0xd7b   : > { %1976 = vadd.xlane.f32.xlu1 %v1975_v57 }
 0xd7c   : > { %3351 = vpow2.f32 %v2189_v63  ;;  %v3316_v63 = vld [vmem:[#allocation25] sm:$0xff]  }
 0xd81   : > { %v3350_v58 = vpop.eup %3349 }
 0xd82   : > { %v2083_v59 = vsel %vm1565_vm6, %v3350_v58, 0.0 }
 0xd83   : > { %2084 = vadd.xlane.f32.xlu0 %v2083_v59 }
 0xd89   : > { %v3352_v1 = vpop.eup %3351 }
 0xd8a   : > { %v2191_v2 = vsel %vm1565_vm6, %v3352_v1, 0.0 }
 0xd8c   : > { %1981 = vrot.lane.b32.xlu1 %v4482_v61, %s3878_s27 }
 0xd90   : > { %2089 = vrot.lane.b32.xlu1 %v4482_v61, %s3877_s13 }
 0xd91   : > { %v1867_v3 = vpop.xlane.xlu0 %1866 }
 0xd92   : > { %3353 = vrcp.f32 %v1867_v3  ;;  %v3320_v3 = vld [vmem:[%s4683_s22 + $0x20] sm:$0xff]  }
 0xd99   : > { %1872 = vrot.lane.b32.xlu0 %v4482_v61, %s3875_s30  ;;  %s4766_s30 = smov 24  }
 0xd9f   : > { %v3354_v6 = vpop.eup %3353 }
 0xda0   : > { %v1869_v9 = vmul.f32 %v3354_v6, %v3346_v49  ;;  %v2857_v49 = vld [vmem:[%s4680_s19] ss:$0 sm:$0xff]  ;;  %v3322_v6 = vld [vmem:[%s4683_s22 + $0x10] sm:$0xff]  }
 0xda2   : > { %v1870_v11 = vpack.c.bf16 %v1869_v9, %v1869_v9 }
 0xdb4   : > { %2192 = vadd.xlane.f32.xlu1 %v2191_v2  ;;  %v3319_v2 = vld [vmem:[%s4683_s22 + $0x28] sm:$0xff]  }
 0xdc5   : > { %2197 = vrot.lane.b32.xlu1 %v4482_v61, %s3881_s18  ;;  %s2817_s18 = sshll.u32 %s4281_s9, 3 }
 0xdc6   : > { %s979_s16 = scalar_lea.vmem [#allocation26], %s2817_s18 }
 0xdc7   : > { %s2551_s7 = sshll.u32 %s979_s16, 4  ;;  %s4619_s7 = int_to_ptr.vmem [resolvable:$true] %s2551_s7 }
 0xe04   : > { %v1977_v5 = vpop.xlane.xlu1 %1976 }
 0xe05   : > { %3355 = vrcp.f32 %v1977_v5  ;;  %v3321_v5 = vld [vmem:[%s4683_s22 + $0x18] sm:$0xff]  }
 0xe08   : > { %v1982_v13 = vpop.permute.xlu1 %1981 }
 0xe0c   : > { %v2085_v7 = vpop.xlane.xlu0 %2084  ;;  %v2090_v16 = vpop.permute.xlu1 %2089 }
 0xe0d   : > { %3357 = vrcp.f32 %v2085_v7 }
 0xe10   : > { %v1873_v10 = vpop.permute.xlu0 %1872 }
 0xe11   : > { %3027 = vmatpush3.bf16.msra.mxu1 %v1873_v10 }
 0xe12   : > { %3038 = vmatprep.subr.bf16.mxu1 %v3872_v8  ;;  %v3356_v12 = vpop.eup %3355 }
 0xe13   : > { %v1979_v61 = vmul.f32 %v3356_v12, %v3348_v56  ;;  %v2861_v12 = vld [vmem:[#allocation13] ss:$0 sm:$0xff] }
 0xe14   : > { %3029 = vmatmul.mubr.msk.bf16.vlgmr.msra.gmra.mxu1 %vm1565_vm6, %v1870_v11 }
 0xe15   : > { %3039 = vmatpush3.bf16.msra.mxu1 %v1982_v13  ;;  %3040 = vmatprep.mubr.msk.bf16.mxu1 %vm3873_vm1, %v3872_v8  ;;  %v1980_v14 = vpack.c.bf16 %v1979_v61, %v1979_v61  ;;  %v2862_v61 = vld [vmem:[#allocation14] ss:$0 sm:$0xff] }
 0xe16   : > { %3050 = vmatprep.subr.bf16.mxu1 %v3872_v8 }
 0xe1a   : > { %v3358_v15 = vpop.eup %3357 }
 0xe1b   : > { %v2087_v17 = vmul.f32 %v3358_v15, %v3350_v58 }
 0xe1c   : > { %3041 = vmatmul.mubr.msk.bf16.vlgmr.msra.gmra.mxu1 %vm1565_vm6, %v1980_v14 }
 0xe1d   : > { %3051 = vmatpush3.bf16.msra.mxu1 %v2090_v16  ;;  %3052 = vmatprep.mubr.msk.bf16.mxu1 %vm3873_vm1, %v3872_v8  ;;  %v2088_v18 = vpack.c.bf16 %v2087_v17, %v2087_v17  ;;  %v3323_v17 = vld [vmem:[%s4683_s22 + $0x8] sm:$0xff]  }
 0xe1e   : > { %3062 = vmatprep.subr.bf16.mxu1 %v3872_v8 }
 0xe24   : > { %3053 = vmatmul.mubr.msk.bf16.vlgmr.msra.gmra.mxu1 %vm1565_vm6, %v2088_v18  ;;  %v3324_v18 = vld [vmem:[%s4683_s22] sm:$0xff]  }
 0xe25   : > { %3064 = vmatprep.mubr.msk.bf16.mxu1 %vm3873_vm1, %v3872_v8 }
 0xe3d   : > { %v2193_v19 = vpop.xlane.xlu1 %2192 }
 0xe3e   : > { %3359 = vrcp.f32 %v2193_v19  ;;  %v2863_v19 = vld [vmem:[%s4767_s21] ss:$0 sm:$0xff] }
 0xe41   : > { %v2198_v20 = vpop.permute.xlu1 %2197 }
 0xe42   : > { %3063 = vmatpush3.bf16.msra.mxu1 %v2198_v20 }
 0xe43   : > { %3076 = vmatprep.subr.bf16.mxu1 %v3872_v8 }
 0xe4b   : > { %v3360_v21 = vpop.eup %3359 }
 0xe4c   : > { %v2195_v22 = vmul.f32 %v3360_v21, %v3352_v1  ;;  %v3318_v1 = vld [vmem:[%s4683_s22 + $0x30] sm:$0xff]  }
 0xe4e   : > { %v2196_v23 = vpack.c.bf16 %v2195_v22, %v2195_v22 }
 0xe50   : > { %3065 = vmatmul.mubr.msk.bf16.vlgmr.msra.gmra.mxu1 %vm1565_vm6, %v2196_v23 }
 0xe51   : > { %3080 = vmatprep.mubr.msk.bf16.mxu1 %vm3873_vm1, %v3872_v8  ;;  %3077 = vmatpush3.bf16.msra.mxu1 %v3315_v62 }
 0xe52   : > { %3078 = vmatprep.subr.bf16.mxu1 %v3872_v8 }
 0xe55   : > { %3079 = vmatpush3.bf16.msra.mxu1 %v3316_v63 }
 0xed4   : > { %v1912_v25 = vpop.f32.mrf.mxu1 }
 0xed6   : > { %v3030_v26 = vpop.f32.mrf.mxu1 }
 0xed8   : > { %v1915_v27 = vpop.f32.mrf.mxu1 }
 0xeda   : > { %v3031_v29 = vpop.f32.mrf.mxu1 }
 0xedc   : > { %v2021_v30 = vpop.f32.mrf.mxu1 }
 0xedd   : > { %2244 = vrot.lane.b32.xlu0 %v2021_v30, %s3886_s24 }
 0xede   : > { %v3042_v31 = vpop.f32.mrf.mxu1 }
 0xee0   : > { %v2024_v32 = vpop.f32.mrf.mxu1 }
 0xee2   : > { %v3043_v33 = vpop.f32.mrf.mxu1 }
 0xee4   : > { %v2129_v34 = vpop.f32.mrf.mxu1 }
 0xee5   : > { %2248 = vrot.lane.b32.xlu1 %v2129_v34, %s4765_s0  ;;  %s3757_s0 = scalar_lea.vmem %s4619_s7, 128 }
 0xee6   : > { %v3054_v38 = vpop.f32.mrf.mxu1  ;;  %p3758_p10 = scmp.ne.s32.totalorder %s4619_s7, %s3757_s0 }
 0xee8   : > { %v2132_v36 = vpop.f32.mrf.mxu1  ;;  %p3759_p5 = pnand %p3758_p10, %p4770_p2 }
 0xeea   : > { %v3055_v35 = vpop.f32.mrf.mxu1  ;;  %p3760_p8 = pneg %p3759_p5 }
 0xf10   : > { %v2237_v39 = vpop.f32.mrf.mxu1 }
 0xf11   : > { %2252 = vrot.lane.b32.xlu0 %v2237_v39, %s4766_s30  ;;  %s3889_s30 = smov [#allocation26]  }
 0xf12   : > { %v3066_v0 = vpop.f32.mrf.mxu1  ;;  %s3761_s13 = sshll.u32 %s3889_s30, 4  ;;  %s3762_s13 = int_to_ptr.vmem [resolvable:$false] %s3761_s13 }
 0xf13   : > { %s3763_s27 = scalar_lea.vmem %s3762_s13, 256  ;;  %p3764_p9 = scmp.lt.s32.totalorder %s4619_s7, %s3762_s13 }
 0xf14   : > { %v2240_v40 = vpop.f32.mrf.mxu1  ;;  %p3765_p4 = scmp.lt.s32.totalorder %s3763_s27, %s3757_s0 }
 0xf16   : > { %v3067_v41 = vpop.f32.mrf.mxu1  ;;  %p3766_p11 = por %p3765_p4, %p3764_p9 }
 0xf18   : > { %p3767_p12 = pnand %p3766_p11, %p3760_p8 }
 0xf4f   : > { %v2245_v42 = vpop.permute.xlu0 %2244 }
 0xf50   : > { %v2255_v44 = vsel %vm1113_vm2, %v1912_v25, %v2245_v42 }
 0xf57   : > { %v2249_v43 = vpop.permute.xlu1 %2248 }
 0xf58   : > { %v2256_v45 = vsel %vm1565_vm6, %v2255_v44, %v2249_v43 }
 0xf83   : > { %v2253_v46 = vpop.permute.xlu0 %2252 }
 0xf84   : > { %v2257_v47 = vsel %vm1567_vm7, %v2256_v45, %v2253_v46 }
 0xf85   : > { %v2258_v48 = vpack.c.bf16 %v2257_v47, %v2257_v47 }
 0xf87   : > { %3073 = vmatmul.mubr.msk.bf16.vlgmr.msra.gmra.mxu0 %vm995_vm0, %v2258_v48 }
 0xf88   : > { %3100 = vmatprep.mubr.msk.bf16.mxu0 %vm3873_vm1, %v3872_v8 }
0x1047   : > { %v2319_v50 = vpop.f32.mrf.mxu0 }
0x1048   : > { %v2320_v51 = vadd.f32 %v2857_v49, %v2319_v50 }
0x1049   : > { %v3074_v52 = vpop.f32.mrf.mxu0 }
0x104a   : > { %v4566_v53 = vadd.f32 %v2320_v51, %v4456_v28  ;;  %v3317_v28 = vld [vmem:[%s4683_s22 + $0x38] sm:$0xff]  }
0x104b   : > { %v2322_v54 = vpop.f32.mrf.mxu0  ;;  %3085 = vmatpush3.bf16.msra.mxu0 %v3317_v28 }
0x104c   : > { %v2328_v55 = vsel %vm995_vm0, %v4566_v53, 0.0  ;;  %3086 = vmatprep.subr.bf16.mxu0 %v3872_v8 }
0x104d   : > { %2329 = vadd.xlane.f32.xlu1 %v2328_v55  ;;  %v3075_v24 = vpop.f32.mrf.mxu0 }
0x104f   : > { %3087 = vmatpush3.bf16.msra.mxu0 %v3318_v1 }
0x1050   : > { %3088 = vmatprep.subr.bf16.mxu0 %v3872_v8 }
0x1053   : > { %3089 = vmatpush3.bf16.msra.mxu0 %v3319_v2 }
0x1054   : > { %3090 = vmatprep.subr.bf16.mxu0 %v3872_v8 }
0x1057   : > { %3091 = vmatpush3.bf16.msra.mxu0 %v3320_v3 }
0x1058   : > { %3092 = vmatprep.subr.bf16.mxu0 %v3872_v8 }
0x105b   : > { %3093 = vmatpush3.bf16.msra.mxu0 %v3321_v5 }
0x105c   : > { %3094 = vmatprep.subr.bf16.mxu0 %v3872_v8 }
0x105f   : > { %3095 = vmatpush3.bf16.msra.mxu0 %v3322_v6 }
0x1060   : > { %3096 = vmatprep.subr.bf16.mxu0 %v3872_v8 }
0x1063   : > { %3097 = vmatpush3.bf16.msra.mxu0 %v3323_v17 }
0x1064   : > { %3098 = vmatprep.subr.bf16.mxu0 %v3872_v8  ;;  %v2867_v8 = vld [vmem:[%s4768_s2] ss:$0 sm:$0xff] }
0x1067   : > { %3099 = vmatpush3.bf16.msra.mxu0 %v3324_v18 }
0x10d6   : > { %v2330_v56 = vpop.xlane.xlu1 %2329 }
0x10d7   : > { %v2331_v57 = vmul.f32 0.03125, %v2330_v56 }
0x10d9   : > { %v2332_v58 = vsub.f32 %v4566_v53, %v2331_v57 }
0x10db   : > { %v2333_v59 = vmul.f32 %v2332_v58, %v2332_v58 }
0x10dd   : > { %v2334_v60 = vsel %vm995_vm0, %v2333_v59, 0.0 }
0x10de   : > { %2335 = vadd.xlane.f32.xlu0 %v2334_v60 }
0x1167   : > { %v2336_v7 = vpop.xlane.xlu0 %2335 }
0x1168   : > { %v2337_v9 = vmul.f32 0.03125, %v2336_v7 }
0x116a   : > { %v2338_v10 = vadd.f32 1e-05, %v2337_v9 }
0x116c   : > { %3361 = vrsqrt.f32 %v2338_v10 }
0x1179   : > { %v3362_v11 = vpop.eup %3361 }
0x117a   : > { %v2340_v13 = vmul.f32 %v3362_v11, %v2332_v58 }
0x117c   : > { %v2347_v14 = vmul.f32 %v2861_v12, %v2340_v13 }
0x117e   : > { %v2354_v15 = vadd.f32 %v2862_v61, %v2347_v14 }
0x1180   : > { %v2355_v16 = vpack.c.bf16 %v2354_v15, %v2354_v15 }
0x1182   : > { %3081 = vmatmul.mubr.msk.bf16.vlgmr.msra.gmra.mxu1 %vm995_vm0, %v2355_v16 }
0x1242   : > { %v2416_v20 = vpop.f32.mrf.mxu1 }
0x1243   : > { %v2417_v21 = vadd.f32 %v2863_v19, %v2416_v20 }
0x1244   : > { %v3082_v22 = vpop.f32.mrf.mxu1 }
0x1245   : > { %v2422_v23 = vmax.f32 %v2417_v21, 0.0 }
0x1246   : > { %v2419_v25 = vpop.f32.mrf.mxu1 }
0x1247   : > { %v2423_v26 = vpack.c.bf16 %v2422_v23, %v2422_v23 }
0x1248   : > { %v3083_v27 = vpop.f32.mrf.mxu1 }
0x1249   : > { %3101 = vmatmul.mubr.bf16.vlgmr.msra.gmra.mxu0 %v2423_v26 }
0x1309   : > { %v2529_v4 = vpop.f32.mrf.mxu0 }
0x130a   : > { %v2530_v29 = vadd.f32 %v2867_v8, %v2529_v4 }
0x130b   : > { %v3102_v30 = vpop.f32.mrf.mxu0 }
0x130c   : > { %v2535_v31 = vadd.f32 %v2530_v29, %v4566_v53 }
0x130d   : > { %v2532_v32 = vpop.f32.mrf.mxu0 }
0x130e   : > { %2536 = vst.msk [vmem:[%s979_s16] sm:$0xff] %vm995_vm0, %v2535_v31 }
0x130f   : > { %v3103_v33 = vpop.f32.mrf.mxu0 }
0x1310   : > { %3770 = shalt.err (!%p3767_p12)
}
0x1311   : > { %s3771_s11 = scalar_lea.hbm %s4617_s20, 128  ;;  %s3775_s18 = scalar_lea.hbm %s4769_s3, 256 }
0x1312   : > { %p3772_p13 = scmp.ne.s32.totalorder %s4617_s20, %s3771_s11  ;;  %p3776_p0 = scmp.lt.s32.totalorder %s4617_s20, %s4769_s3 }
0x1313   : > { %p3777_p7 = scmp.lt.s32.totalorder %s3775_s18, %s3771_s11 }
0x1314   : > { %p3773_p1 = pnand %p3772_p13, %p4770_p2 }
0x1315   : > { %p3778_p3 = por %p3777_p7, %p3776_p0 }
0x1316   : > { %p3774_p6 = pneg %p3773_p1 }
0x1318   : > { %p3779_p10 = pnand %p3778_p3, %p3774_p6 }
0x131a   : > { %3782 = shalt.err (!%p3779_p10)
}
0x131b   : > { %3160 = dma.vmem_to_hbm [thread:$0]  (%p4770_p2), %s4619_s7, 128, %s4617_s20, %s2538_s29  }
0x131c PF: > { %s2563_s2 = sand.u32 1, %s3841_s5   ;;  %p4771_p5 = scmp.ne.s32.totalorder %s4742_s1, 0 }
0x131d   : > { %p4772_p8 = scmp.ge.s32.totalorder %s3853_s28, 2  ;;  %s2564_s15 = scalar_lea.sflag [#allocation4], %s2563_s2 }
0x131f   : > { %p3210_p9 = pnand %p4772_p8, %p4771_p5 }
0x1321   : > { %p3211_p4 = pneg %p3210_p9 }
0x1323   : > { %3836 = dma.done.wait (%p3211_p4), %s2564_s15, 128  }
0x1324   : > { %3838 = vsyncadd (%p3211_p4), %s2564_s15, 4294967168  ;;  %s4773_s16 = sld [smem:[#allocation37_spill]]  ;;  %p46_p11 = scmp.ge.s32.totalorder %s4181_s6, 4  }
0x1325   : > { %s4774_s27 = sld [smem:[#allocation38_spill]]  ;;  %s4775_s5 = smov %s3845_s26 }
0x1326   : > { %s4777_s28 = smov %s4181_s6  ;;  %48 = sbr.rel (!%p46_p11) target bundleno = 34 (0x22), region = 232 }
0x132a   : > { %s4776_s26 = smov %s4773_s16 }
0x132b   :  { %2569 = vsyncpa [#allocation3], 1 }
0x132c   :  { %2571 = vsyncpa [#allocation3 + $0x1], 1 }
0x132d   :  { %2572 = vsyncpa [#allocation6], 1 }
0x132e   :  { %2574 = vsyncpa [#allocation6 + $0x1], 1 }
0x132f   :  { %2575 = vsyncpa [#allocation9], 1 }
0x1330   :  { %2576 = vsyncpa [#allocation12], 1 }
0x1331   :  { %2577 = vsyncpa [#allocation15], 1 }
0x1332   :  { %2578 = vsyncpa [#allocation18], 1 }
0x1333   :  { %2579 = vsyncpa [#allocation21], 1 }
0x1334   :  { %2580 = vsyncpa [#allocation24], 1 }
0x1335   :  { %2581 = vsyncpa [#allocation4], 1 }
0x1336   :  { %2583 = vsyncpa [#allocation4 + $0x1], 1 }

</bundles_post_ra>
